<compile_context>
chip_gen: v6e
topology: v6e:2x2x1
jax: 0.10.0
libtpu: 0.0.40
codegen_flags: <defaults>
</compile_context>

<pallas_src>
import functools

import numpy as np
import jax
import jax.numpy as jnp
from jax.experimental import pallas as pl


# ----------------------------------------------------------------------------
# Fused Pallas kernel: conv1+relu -> conv2+relu -> conv3+relu -> fc heads ->
# reparameterize.  All inputs are full-array VMEM blocks (grid=(1,)).
# ----------------------------------------------------------------------------
def _encoder_fused_kernel(x_ref,
                          gh1_ref, m1_ref, b1_ref,
                          gh2_ref, m2_ref, b2_ref,
                          gh3_ref, m3_ref, b3_ref,
                          ghf_ref, mf_ref, bf_ref,
                          eps_ref,
                          z_ref, mu_ref, lv_ref):

    def layer(xv, gh_ref, m_ref, bias, relu):
        # out = sum_kh (GH[kh] @ X) @ M[kh] + bias   (all plain 2-D MXU matmuls)
        k_taps = gh_ref.shape[0]
        acc = None
        for kh in range(k_taps):                       # static unroll (4 taps)
            t = jnp.dot(gh_ref[kh], xv, preferred_element_type=jnp.float32)
            p = jnp.dot(t, m_ref[kh], preferred_element_type=jnp.float32)
            acc = p if acc is None else acc + p
        acc = acc + bias
        return jnp.maximum(acc, 0.0) if relu else acc

    h = layer(x_ref[...], gh1_ref, m1_ref, b1_ref[...], True)    # (B*8, 8*F)
    h = layer(h,          gh2_ref, m2_ref, b2_ref[...], True)    # (B*4, 4*F)
    h = layer(h,          gh3_ref, m3_ref, b3_ref[...], True)    # (B*4, 4*F)
    o = layer(h,          ghf_ref, mf_ref, bf_ref[...], False)   # (B, 2*zd)

    zd = mu_ref.shape[-1]
    mu = o[:, :zd]
    lv = o[:, zd:2 * zd]
    std = jnp.exp(0.5 * lv)
    z_ref[...] = (mu + eps_ref[...] * std).astype(z_ref.dtype)
    mu_ref[...] = mu.astype(mu_ref.dtype)
    lv_ref[...] = lv.astype(lv_ref.dtype)


# ----------------------------------------------------------------------------
# Constant structured-matrix builders (trace-time glue, tiny)
# ----------------------------------------------------------------------------
def _build_row_gather(k, stride, pad_top, batch, h_in, oh):
    """GH[kh] (batch*oh, batch*h_in): selects input row stride*oh+kh-pad_top."""
    gh = np.zeros((k, batch * oh, batch * h_in), np.float32)
    for kh in range(k):
        for bb in range(batch):
            for o in range(oh):
                hh = stride * o + kh - pad_top
                if 0 <= hh < h_in:
                    gh[kh, bb * oh + o, bb * h_in + hh] = 1.0
    return jnp.asarray(gh)


def _build_col_weight(wc, k, stride, pad_left, w_in, ow):
    """M[kh] ((w_in*cin), (ow*cout)): width-gather (stride/pad) x conv weight.

    wc: conv weight in (kh, kw, cin, cout) order.
    """
    cin, cout = wc.shape[2], wc.shape[3]
    gw = np.zeros((k, w_in, ow), np.float32)
    for kw in range(k):
        for o in range(ow):
            ww = stride * o + kw - pad_left
            if 0 <= ww < w_in:
                gw[kw, ww, o] = 1.0
    m = jnp.einsum('xwo,kxcd->kwcod', jnp.asarray(gw), wc)   # (kh,w,ci,ow,co)
    return m.reshape(k, w_in * cin, ow * cout)


# ----------------------------------------------------------------------------
# Parameters (same convention as before: w_mu/w_lv are (in_features, z_dim))
# ----------------------------------------------------------------------------
def init_params(key, z_dim, channel_dim, x_dim, filt):
    ks = jax.random.split(key, 10)
    scale = 0.05
    p = {}
    p["w1"] = scale * jax.random.normal(ks[0], (filt, channel_dim, 4, 4), jnp.float32)
    p["b1"] = scale * jax.random.normal(ks[1], (filt,), jnp.float32)
    p["w2"] = scale * jax.random.normal(ks[2], (filt, filt, 4, 4), jnp.float32)
    p["b2"] = scale * jax.random.normal(ks[3], (filt,), jnp.float32)
    p["w3"] = scale * jax.random.normal(ks[4], (filt, filt, 4, 4), jnp.float32)
    p["b3"] = scale * jax.random.normal(ks[5], (filt,), jnp.float32)
    fc_in = int(filt * x_dim / 16)
    p["w_mu"] = scale * jax.random.normal(ks[6], (fc_in, z_dim), jnp.float32)
    p["b_mu"] = scale * jax.random.normal(ks[7], (z_dim,), jnp.float32)
    p["w_lv"] = scale * jax.random.normal(ks[8], (fc_in, z_dim), jnp.float32)
    p["b_lv"] = scale * jax.random.normal(ks[9], (z_dim,), jnp.float32)
    return p


# ----------------------------------------------------------------------------
# Forward pass
# ----------------------------------------------------------------------------
@functools.partial(jax.jit, static_argnames=("filt",))
def encoder_forward(params, x_nchw, eps, filt):
    """Returns (z, mu, logvar), matching the PyTorch module semantics."""
    bsz, cin, hh, ww = x_nchw.shape
    zd = params["b_mu"].shape[0]

    # Conv geometry: 16 -> 8 -> 4 -> (ZeroPad2d((1,2,1,2)) + k4 s1) -> 4
    oh1, ow1 = hh // 2, ww // 2
    oh2, ow2 = oh1 // 2, ow1 // 2
    oh3, ow3 = oh2, ow2

    # Activation 0 layout: rows = (batch, h), cols = (w, cin) with cin minor.
    x0 = jnp.transpose(x_nchw, (0, 2, 3, 1)).reshape(bsz * hh, ww * cin)

    # Conv weights in (kh, kw, cin, cout) order
    wc1 = jnp.transpose(params["w1"], (2, 3, 1, 0))
    wc2 = jnp.transpose(params["w2"], (2, 3, 1, 0))
    wc3 = jnp.transpose(params["w3"], (2, 3, 1, 0))

    # Conv1: k=4, stride=2, pad=1
    gh1 = _build_row_gather(4, 2, 1, bsz, hh, oh1)
    m1 = _build_col_weight(wc1, 4, 2, 1, ww, ow1)
    bt1 = jnp.tile(params["b1"], ow1).reshape(1, ow1 * filt)

    # Conv2: k=4, stride=2, pad=1
    gh2 = _build_row_gather(4, 2, 1, bsz, oh1, oh2)
    m2 = _build_col_weight(wc2, 4, 2, 1, ow1, ow2)
    bt2 = jnp.tile(params["b2"], ow2).reshape(1, ow2 * filt)

    # ZeroPad2d((left=1, right=2, top=1, bottom=2)) + Conv3: k=4, stride=1
    # (bottom/right padding is encoded implicitly via the output extent)
    gh3 = _build_row_gather(4, 1, 1, bsz, oh2, oh3)
    m3 = _build_col_weight(wc3, 4, 1, 1, ow2, ow3)
    bt3 = jnp.tile(params["b3"], ow3).reshape(1, ow3 * filt)

    # FC heads as a "full-extent conv": kernel (oh3, ow3), output 1x1,
    # Cout = 2*zd (mu | logvar packed).  This also absorbs the NCHW-order
    # flatten of z.view(B, -1) by permuting the FC weight rows here.
    w_mu_c = params["w_mu"].reshape(filt, oh3, ow3, zd).transpose(1, 2, 0, 3)
    w_lv_c = params["w_lv"].reshape(filt, oh3, ow3, zd).transpose(1, 2, 0, 3)
    wcf = jnp.concatenate([w_mu_c, w_lv_c], axis=-1)          # (4,4,filt,2*zd)
    ghf = _build_row_gather(oh3, 1, 0, bsz, oh3, 1)
    mf = _build_col_weight(wcf, ow3, 1, 0, ow3, 1)
    btf = jnp.concatenate([params["b_mu"], params["b_lv"]]).reshape(1, 2 * zd)

    def _spec(shape):
        zeros = (0,) * len(shape)
        return pl.BlockSpec(shape, lambda i: zeros)

    inputs = (x0, gh1, m1, bt1, gh2, m2, bt2, gh3, m3, bt3, ghf, mf, btf, eps)
    z, mu, lv = pl.pallas_call(
        _encoder_fused_kernel,
        out_shape=(
            jax.ShapeDtypeStruct((bsz, zd), jnp.float32),
            jax.ShapeDtypeStruct((bsz, zd), jnp.float32),
            jax.ShapeDtypeStruct((bsz, zd), jnp.float32),
        ),
        grid=(1,),
        in_specs=[_spec(a.shape) for a in inputs],
        out_specs=(_spec((bsz, zd)), _spec((bsz, zd)), _spec((bsz, zd))),
    )(*inputs)
    return z, mu, lv


# ----------------------------------------------------------------------------
# Pure-JAX reference (HIGHEST precision) for correctness verification
# ----------------------------------------------------------------------------
def encoder_reference(params, x, eps):
    prec = jax.lax.Precision.HIGHEST
    dn = ('NCHW', 'OIHW', 'NCHW')
    h = jax.lax.conv_general_dilated(x, params["w1"], (2, 2), ((1, 1), (1, 1)),
                                     dimension_numbers=dn, precision=prec)
    h = jax.nn.relu(h + params["b1"].reshape(1, -1, 1, 1))
    h = jax.lax.conv_general_dilated(h, params["w2"], (2, 2), ((1, 1), (1, 1)),
                                     dimension_numbers=dn, precision=prec)
    h = jax.nn.relu(h + params["b2"].reshape(1, -1, 1, 1))
    h = jax.lax.conv_general_dilated(h, params["w3"], (1, 1), ((1, 2), (1, 2)),
                                     dimension_numbers=dn, precision=prec)
    h = jax.nn.relu(h + params["b3"].reshape(1, -1, 1, 1))
    zf = h.reshape(h.shape[0], -1)                      # NCHW flatten, like torch
    mu = jnp.dot(zf, params["w_mu"], precision=prec) + params["b_mu"]
    lv = jnp.dot(zf, params["w_lv"], precision=prec) + params["b_lv"]
    z = mu + eps * jnp.exp(0.5 * lv)
    return z, mu, lv


if __name__ == "__main__":
    # Small shapes consistent with the module: batch=2, channels=4, 16x16 input.
    B, C, H, W = 2, 4, 16, 16
    X_DIM = H * W                 # 256
    FILT = 32
    Z_DIM = 8

    key = jax.random.PRNGKey(0)
    k_param, k_x, k_eps = jax.random.split(key, 3)

    params = init_params(k_param, Z_DIM, C, X_DIM, FILT)
    x = jax.random.normal(k_x, (B, C, H, W), jnp.float32)
    # eps ~ randn_like(std): drawn deterministically here (reparam noise)
    eps = jax.random.normal(k_eps, (B, Z_DIM), jnp.float32)

    z, mu, logvar = encoder_forward(params, x, eps, FILT)
    jax.block_until_ready((z, mu, logvar))

    assert z.shape == (B, Z_DIM) and mu.shape == (B, Z_DIM) and logvar.shape == (B, Z_DIM)
    assert jnp.all(jnp.isfinite(z)) and jnp.all(jnp.isfinite(mu)) and jnp.all(jnp.isfinite(logvar))

    # Correctness vs. pure-JAX reference
    z_r, mu_r, lv_r = encoder_reference(params, x, eps)
    assert jnp.allclose(mu, mu_r, rtol=1e-2, atol=1e-3), "mu mismatch vs reference"
    assert jnp.allclose(logvar, lv_r, rtol=1e-2, atol=1e-3), "logvar mismatch vs reference"
    assert jnp.allclose(z, z_r, rtol=1e-2, atol=1e-3), "z mismatch vs reference"

    print("KERNEL_OK")
</pallas_src>

<mosaic_0001>
module attributes {stable_mosaic.version = 11 : i64} {
  func.func @_encoder_fused_kernel(%arg0: i32, %arg1: memref<32x64xf32, #tpu.memory_space<vmem>>, %arg2: memref<4x16x32xf32, #tpu.memory_space<vmem>>, %arg3: memref<4x64x256xf32, #tpu.memory_space<vmem>>, %arg4: memref<1x256xf32, #tpu.memory_space<vmem>>, %arg5: memref<4x8x16xf32, #tpu.memory_space<vmem>>, %arg6: memref<4x256x128xf32, #tpu.memory_space<vmem>>, %arg7: memref<1x128xf32, #tpu.memory_space<vmem>>, %arg8: memref<4x8x8xf32, #tpu.memory_space<vmem>>, %arg9: memref<4x128x128xf32, #tpu.memory_space<vmem>>, %arg10: memref<1x128xf32, #tpu.memory_space<vmem>>, %arg11: memref<4x2x8xf32, #tpu.memory_space<vmem>>, %arg12: memref<4x128x16xf32, #tpu.memory_space<vmem>>, %arg13: memref<1x16xf32, #tpu.memory_space<vmem>>, %arg14: memref<2x8xf32, #tpu.memory_space<vmem>>, %arg15: memref<2x8xf32, #tpu.memory_space<vmem>>, %arg16: memref<2x8xf32, #tpu.memory_space<vmem>>, %arg17: memref<2x8xf32, #tpu.memory_space<vmem>>) attributes {dimension_semantics = [#tpu.dimension_semantics<arbitrary>], iteration_bounds = array<i64: 1>, scalar_prefetch = 0 : i64, scratch_operands = 0 : i64, tpu.core_type = #tpu.core_type<tc>, window_params = [{pipeline_mode = #tpu.pipeline_mode<synchronous>, transform_indices = @transform_0, window_bounds = array<i64: 32, 64>}, {pipeline_mode = #tpu.pipeline_mode<synchronous>, transform_indices = @transform_1, window_bounds = array<i64: 4, 16, 32>}, {pipeline_mode = #tpu.pipeline_mode<synchronous>, transform_indices = @transform_2, window_bounds = array<i64: 4, 64, 256>}, {pipeline_mode = #tpu.pipeline_mode<synchronous>, transform_indices = @transform_3, window_bounds = array<i64: 1, 256>}, {pipeline_mode = #tpu.pipeline_mode<synchronous>, transform_indices = @transform_4, window_bounds = array<i64: 4, 8, 16>}, {pipeline_mode = #tpu.pipeline_mode<synchronous>, transform_indices = @transform_5, window_bounds = array<i64: 4, 256, 128>}, {pipeline_mode = #tpu.pipeline_mode<synchronous>, transform_indices = @transform_6, window_bounds = array<i64: 1, 128>}, {pipeline_mode = #tpu.pipeline_mode<synchronous>, transform_indices = @transform_7, window_bounds = array<i64: 4, 8, 8>}, {pipeline_mode = #tpu.pipeline_mode<synchronous>, transform_indices = @transform_8, window_bounds = array<i64: 4, 128, 128>}, {pipeline_mode = #tpu.pipeline_mode<synchronous>, transform_indices = @transform_9, window_bounds = array<i64: 1, 128>}, {pipeline_mode = #tpu.pipeline_mode<synchronous>, transform_indices = @transform_10, window_bounds = array<i64: 4, 2, 8>}, {pipeline_mode = #tpu.pipeline_mode<synchronous>, transform_indices = @transform_11, window_bounds = array<i64: 4, 128, 16>}, {pipeline_mode = #tpu.pipeline_mode<synchronous>, transform_indices = @transform_12, window_bounds = array<i64: 1, 16>}, {pipeline_mode = #tpu.pipeline_mode<synchronous>, transform_indices = @transform_13, window_bounds = array<i64: 2, 8>}, {pipeline_mode = #tpu.pipeline_mode<synchronous>, transform_indices = @transform_14, window_bounds = array<i64: 2, 8>}, {pipeline_mode = #tpu.pipeline_mode<synchronous>, transform_indices = @transform_15, window_bounds = array<i64: 2, 8>}, {pipeline_mode = #tpu.pipeline_mode<synchronous>, transform_indices = @transform_16, window_bounds = array<i64: 2, 8>}]} {
    %c0 = arith.constant 0 : index
    %c0_0 = arith.constant 0 : index
    %0 = vector.load %arg1[%c0, %c0_0] : memref<32x64xf32, #tpu.memory_space<vmem>>, vector<32x64xf32>
    %c0_1 = arith.constant 0 : index
    %c0_2 = arith.constant 0 : index
    %1 = vector.load %arg4[%c0_1, %c0_2] : memref<1x256xf32, #tpu.memory_space<vmem>>, vector<1x256xf32>
    %c0_3 = arith.constant 0 : index
    %c0_4 = arith.constant 0 : index
    %c0_5 = arith.constant 0 : index
    %2 = vector.load %arg2[%c0_3, %c0_4, %c0_5] : memref<4x16x32xf32, #tpu.memory_space<vmem>>, vector<1x16x32xf32>
    %3 = vector.shape_cast %2 : vector<1x16x32xf32> to vector<16x32xf32>
    %cst = arith.constant dense<0.000000e+00> : vector<16x64xf32>
    %4 = tpu.matmul %3, %0, %cst {dimension_numbers = #tpu.dot_dimension_numbers<[1], [0], [0], [1], [0, 0, 1, 1], [], []>} : vector<16x32xf32>, vector<32x64xf32>, vector<16x64xf32> -> vector<16x64xf32>
    %c0_6 = arith.constant 0 : index
    %c0_7 = arith.constant 0 : index
    %c0_8 = arith.constant 0 : index
    %5 = vector.load %arg3[%c0_6, %c0_7, %c0_8] : memref<4x64x256xf32, #tpu.memory_space<vmem>>, vector<1x64x256xf32>
    %6 = vector.shape_cast %5 : vector<1x64x256xf32> to vector<64x256xf32>
    %cst_9 = arith.constant dense<0.000000e+00> : vector<16x256xf32>
    %7 = tpu.matmul %4, %6, %cst_9 {dimension_numbers = #tpu.dot_dimension_numbers<[1], [0], [0], [1], [0, 0, 1, 1], [], []>} : vector<16x64xf32>, vector<64x256xf32>, vector<16x256xf32> -> vector<16x256xf32>
    %c1 = arith.constant 1 : index
    %c0_10 = arith.constant 0 : index
    %c0_11 = arith.constant 0 : index
    %8 = vector.load %arg2[%c1, %c0_10, %c0_11] : memref<4x16x32xf32, #tpu.memory_space<vmem>>, vector<1x16x32xf32>
    %9 = vector.shape_cast %8 : vector<1x16x32xf32> to vector<16x32xf32>
    %cst_12 = arith.constant dense<0.000000e+00> : vector<16x64xf32>
    %10 = tpu.matmul %9, %0, %cst_12 {dimension_numbers = #tpu.dot_dimension_numbers<[1], [0], [0], [1], [0, 0, 1, 1], [], []>} : vector<16x32xf32>, vector<32x64xf32>, vector<16x64xf32> -> vector<16x64xf32>
    %c1_13 = arith.constant 1 : index
    %c0_14 = arith.constant 0 : index
    %c0_15 = arith.constant 0 : index
    %11 = vector.load %arg3[%c1_13, %c0_14, %c0_15] : memref<4x64x256xf32, #tpu.memory_space<vmem>>, vector<1x64x256xf32>
    %12 = vector.shape_cast %11 : vector<1x64x256xf32> to vector<64x256xf32>
    %cst_16 = arith.constant dense<0.000000e+00> : vector<16x256xf32>
    %13 = tpu.matmul %10, %12, %cst_16 {dimension_numbers = #tpu.dot_dimension_numbers<[1], [0], [0], [1], [0, 0, 1, 1], [], []>} : vector<16x64xf32>, vector<64x256xf32>, vector<16x256xf32> -> vector<16x256xf32>
    %14 = arith.addf %7, %13 : vector<16x256xf32>
    %c2 = arith.constant 2 : index
    %c0_17 = arith.constant 0 : index
    %c0_18 = arith.constant 0 : index
    %15 = vector.load %arg2[%c2, %c0_17, %c0_18] : memref<4x16x32xf32, #tpu.memory_space<vmem>>, vector<1x16x32xf32>
    %16 = vector.shape_cast %15 : vector<1x16x32xf32> to vector<16x32xf32>
    %cst_19 = arith.constant dense<0.000000e+00> : vector<16x64xf32>
    %17 = tpu.matmul %16, %0, %cst_19 {dimension_numbers = #tpu.dot_dimension_numbers<[1], [0], [0], [1], [0, 0, 1, 1], [], []>} : vector<16x32xf32>, vector<32x64xf32>, vector<16x64xf32> -> vector<16x64xf32>
    %c2_20 = arith.constant 2 : index
    %c0_21 = arith.constant 0 : index
    %c0_22 = arith.constant 0 : index
    %18 = vector.load %arg3[%c2_20, %c0_21, %c0_22] : memref<4x64x256xf32, #tpu.memory_space<vmem>>, vector<1x64x256xf32>
    %19 = vector.shape_cast %18 : vector<1x64x256xf32> to vector<64x256xf32>
    %cst_23 = arith.constant dense<0.000000e+00> : vector<16x256xf32>
    %20 = tpu.matmul %17, %19, %cst_23 {dimension_numbers = #tpu.dot_dimension_numbers<[1], [0], [0], [1], [0, 0, 1, 1], [], []>} : vector<16x64xf32>, vector<64x256xf32>, vector<16x256xf32> -> vector<16x256xf32>
    %21 = arith.addf %14, %20 : vector<16x256xf32>
    %c3 = arith.constant 3 : index
    %c0_24 = arith.constant 0 : index
    %c0_25 = arith.constant 0 : index
    %22 = vector.load %arg2[%c3, %c0_24, %c0_25] : memref<4x16x32xf32, #tpu.memory_space<vmem>>, vector<1x16x32xf32>
    %23 = vector.shape_cast %22 : vector<1x16x32xf32> to vector<16x32xf32>
    %cst_26 = arith.constant dense<0.000000e+00> : vector<16x64xf32>
    %24 = tpu.matmul %23, %0, %cst_26 {dimension_numbers = #tpu.dot_dimension_numbers<[1], [0], [0], [1], [0, 0, 1, 1], [], []>} : vector<16x32xf32>, vector<32x64xf32>, vector<16x64xf32> -> vector<16x64xf32>
    %c3_27 = arith.constant 3 : index
    %c0_28 = arith.constant 0 : index
    %c0_29 = arith.constant 0 : index
    %25 = vector.load %arg3[%c3_27, %c0_28, %c0_29] : memref<4x64x256xf32, #tpu.memory_space<vmem>>, vector<1x64x256xf32>
    %26 = vector.shape_cast %25 : vector<1x64x256xf32> to vector<64x256xf32>
    %cst_30 = arith.constant dense<0.000000e+00> : vector<16x256xf32>
    %27 = tpu.matmul %24, %26, %cst_30 {dimension_numbers = #tpu.dot_dimension_numbers<[1], [0], [0], [1], [0, 0, 1, 1], [], []>} : vector<16x64xf32>, vector<64x256xf32>, vector<16x256xf32> -> vector<16x256xf32>
    %28 = arith.addf %21, %27 : vector<16x256xf32>
    %29 = vector.broadcast %1 : vector<1x256xf32> to vector<16x256xf32>
    %30 = arith.addf %28, %29 : vector<16x256xf32>
    %cst_31 = arith.constant 0.000000e+00 : f32
    %31 = vector.broadcast %cst_31 : f32 to vector<16x256xf32>
    %32 = arith.maximumf %30, %31 : vector<16x256xf32>
    %c0_32 = arith.constant 0 : index
    %c0_33 = arith.constant 0 : index
    %33 = vector.load %arg7[%c0_32, %c0_33] : memref<1x128xf32, #tpu.memory_space<vmem>>, vector<1x128xf32>
    %c0_34 = arith.constant 0 : index
    %c0_35 = arith.constant 0 : index
    %c0_36 = arith.constant 0 : index
    %34 = vector.load %arg5[%c0_34, %c0_35, %c0_36] : memref<4x8x16xf32, #tpu.memory_space<vmem>>, vector<1x8x16xf32>
    %35 = vector.shape_cast %34 : vector<1x8x16xf32> to vector<8x16xf32>
    %cst_37 = arith.constant dense<0.000000e+00> : vector<8x256xf32>
    %36 = tpu.matmul %35, %32, %cst_37 {dimension_numbers = #tpu.dot_dimension_numbers<[1], [0], [0], [1], [0, 0, 1, 1], [], []>} : vector<8x16xf32>, vector<16x256xf32>, vector<8x256xf32> -> vector<8x256xf32>
    %c0_38 = arith.constant 0 : index
    %c0_39 = arith.constant 0 : index
    %c0_40 = arith.constant 0 : index
    %37 = vector.load %arg6[%c0_38, %c0_39, %c0_40] : memref<4x256x128xf32, #tpu.memory_space<vmem>>, vector<1x256x128xf32>
    %38 = vector.shape_cast %37 : vector<1x256x128xf32> to vector<256x128xf32>
    %cst_41 = arith.constant dense<0.000000e+00> : vector<8x128xf32>
    %39 = tpu.matmul %36, %38, %cst_41 {dimension_numbers = #tpu.dot_dimension_numbers<[1], [0], [0], [1], [0, 0, 1, 1], [], []>} : vector<8x256xf32>, vector<256x128xf32>, vector<8x128xf32> -> vector<8x128xf32>
    %c1_42 = arith.constant 1 : index
    %c0_43 = arith.constant 0 : index
    %c0_44 = arith.constant 0 : index
    %40 = vector.load %arg5[%c1_42, %c0_43, %c0_44] : memref<4x8x16xf32, #tpu.memory_space<vmem>>, vector<1x8x16xf32>
    %41 = vector.shape_cast %40 : vector<1x8x16xf32> to vector<8x16xf32>
    %cst_45 = arith.constant dense<0.000000e+00> : vector<8x256xf32>
    %42 = tpu.matmul %41, %32, %cst_45 {dimension_numbers = #tpu.dot_dimension_numbers<[1], [0], [0], [1], [0, 0, 1, 1], [], []>} : vector<8x16xf32>, vector<16x256xf32>, vector<8x256xf32> -> vector<8x256xf32>
    %c1_46 = arith.constant 1 : index
    %c0_47 = arith.constant 0 : index
    %c0_48 = arith.constant 0 : index
    %43 = vector.load %arg6[%c1_46, %c0_47, %c0_48] : memref<4x256x128xf32, #tpu.memory_space<vmem>>, vector<1x256x128xf32>
    %44 = vector.shape_cast %43 : vector<1x256x128xf32> to vector<256x128xf32>
    %cst_49 = arith.constant dense<0.000000e+00> : vector<8x128xf32>
    %45 = tpu.matmul %42, %44, %cst_49 {dimension_numbers = #tpu.dot_dimension_numbers<[1], [0], [0], [1], [0, 0, 1, 1], [], []>} : vector<8x256xf32>, vector<256x128xf32>, vector<8x128xf32> -> vector<8x128xf32>
    %46 = arith.addf %39, %45 : vector<8x128xf32>
    %c2_50 = arith.constant 2 : index
    %c0_51 = arith.constant 0 : index
    %c0_52 = arith.constant 0 : index
    %47 = vector.load %arg5[%c2_50, %c0_51, %c0_52] : memref<4x8x16xf32, #tpu.memory_space<vmem>>, vector<1x8x16xf32>
    %48 = vector.shape_cast %47 : vector<1x8x16xf32> to vector<8x16xf32>
    %cst_53 = arith.constant dense<0.000000e+00> : vector<8x256xf32>
    %49 = tpu.matmul %48, %32, %cst_53 {dimension_numbers = #tpu.dot_dimension_numbers<[1], [0], [0], [1], [0, 0, 1, 1], [], []>} : vector<8x16xf32>, vector<16x256xf32>, vector<8x256xf32> -> vector<8x256xf32>
    %c2_54 = arith.constant 2 : index
    %c0_55 = arith.constant 0 : index
    %c0_56 = arith.constant 0 : index
    %50 = vector.load %arg6[%c2_54, %c0_55, %c0_56] : memref<4x256x128xf32, #tpu.memory_space<vmem>>, vector<1x256x128xf32>
    %51 = vector.shape_cast %50 : vector<1x256x128xf32> to vector<256x128xf32>
    %cst_57 = arith.constant dense<0.000000e+00> : vector<8x128xf32>
    %52 = tpu.matmul %49, %51, %cst_57 {dimension_numbers = #tpu.dot_dimension_numbers<[1], [0], [0], [1], [0, 0, 1, 1], [], []>} : vector<8x256xf32>, vector<256x128xf32>, vector<8x128xf32> -> vector<8x128xf32>
    %53 = arith.addf %46, %52 : vector<8x128xf32>
    %c3_58 = arith.constant 3 : index
    %c0_59 = arith.constant 0 : index
    %c0_60 = arith.constant 0 : index
    %54 = vector.load %arg5[%c3_58, %c0_59, %c0_60] : memref<4x8x16xf32, #tpu.memory_space<vmem>>, vector<1x8x16xf32>
    %55 = vector.shape_cast %54 : vector<1x8x16xf32> to vector<8x16xf32>
    %cst_61 = arith.constant dense<0.000000e+00> : vector<8x256xf32>
    %56 = tpu.matmul %55, %32, %cst_61 {dimension_numbers = #tpu.dot_dimension_numbers<[1], [0], [0], [1], [0, 0, 1, 1], [], []>} : vector<8x16xf32>, vector<16x256xf32>, vector<8x256xf32> -> vector<8x256xf32>
    %c3_62 = arith.constant 3 : index
    %c0_63 = arith.constant 0 : index
    %c0_64 = arith.constant 0 : index
    %57 = vector.load %arg6[%c3_62, %c0_63, %c0_64] : memref<4x256x128xf32, #tpu.memory_space<vmem>>, vector<1x256x128xf32>
    %58 = vector.shape_cast %57 : vector<1x256x128xf32> to vector<256x128xf32>
    %cst_65 = arith.constant dense<0.000000e+00> : vector<8x128xf32>
    %59 = tpu.matmul %56, %58, %cst_65 {dimension_numbers = #tpu.dot_dimension_numbers<[1], [0], [0], [1], [0, 0, 1, 1], [], []>} : vector<8x256xf32>, vector<256x128xf32>, vector<8x128xf32> -> vector<8x128xf32>
    %60 = arith.addf %53, %59 : vector<8x128xf32>
    %61 = vector.broadcast %33 : vector<1x128xf32> to vector<8x128xf32>
    %62 = arith.addf %60, %61 : vector<8x128xf32>
    %cst_66 = arith.constant 0.000000e+00 : f32
    %63 = vector.broadcast %cst_66 : f32 to vector<8x128xf32>
    %64 = arith.maximumf %62, %63 : vector<8x128xf32>
    %c0_67 = arith.constant 0 : index
    %c0_68 = arith.constant 0 : index
    %65 = vector.load %arg10[%c0_67, %c0_68] : memref<1x128xf32, #tpu.memory_space<vmem>>, vector<1x128xf32>
    %c0_69 = arith.constant 0 : index
    %c0_70 = arith.constant 0 : index
    %c0_71 = arith.constant 0 : index
    %66 = vector.load %arg8[%c0_69, %c0_70, %c0_71] : memref<4x8x8xf32, #tpu.memory_space<vmem>>, vector<1x8x8xf32>
    %67 = vector.shape_cast %66 : vector<1x8x8xf32> to vector<8x8xf32>
    %cst_72 = arith.constant dense<0.000000e+00> : vector<8x128xf32>
    %68 = tpu.matmul %67, %64, %cst_72 {dimension_numbers = #tpu.dot_dimension_numbers<[1], [0], [0], [1], [0, 0, 1, 1], [], []>} : vector<8x8xf32>, vector<8x128xf32>, vector<8x128xf32> -> vector<8x128xf32>
    %c0_73 = arith.constant 0 : index
    %c0_74 = arith.constant 0 : index
    %c0_75 = arith.constant 0 : index
    %69 = vector.load %arg9[%c0_73, %c0_74, %c0_75] : memref<4x128x128xf32, #tpu.memory_space<vmem>>, vector<1x128x128xf32>
    %70 = vector.shape_cast %69 : vector<1x128x128xf32> to vector<128x128xf32>
    %cst_76 = arith.constant dense<0.000000e+00> : vector<8x128xf32>
    %71 = tpu.matmul %68, %70, %cst_76 {dimension_numbers = #tpu.dot_dimension_numbers<[1], [0], [0], [1], [0, 0, 1, 1], [], []>} : vector<8x128xf32>, vector<128x128xf32>, vector<8x128xf32> -> vector<8x128xf32>
    %c1_77 = arith.constant 1 : index
    %c0_78 = arith.constant 0 : index
    %c0_79 = arith.constant 0 : index
    %72 = vector.load %arg8[%c1_77, %c0_78, %c0_79] : memref<4x8x8xf32, #tpu.memory_space<vmem>>, vector<1x8x8xf32>
    %73 = vector.shape_cast %72 : vector<1x8x8xf32> to vector<8x8xf32>
    %cst_80 = arith.constant dense<0.000000e+00> : vector<8x128xf32>
    %74 = tpu.matmul %73, %64, %cst_80 {dimension_numbers = #tpu.dot_dimension_numbers<[1], [0], [0], [1], [0, 0, 1, 1], [], []>} : vector<8x8xf32>, vector<8x128xf32>, vector<8x128xf32> -> vector<8x128xf32>
    %c1_81 = arith.constant 1 : index
    %c0_82 = arith.constant 0 : index
    %c0_83 = arith.constant 0 : index
    %75 = vector.load %arg9[%c1_81, %c0_82, %c0_83] : memref<4x128x128xf32, #tpu.memory_space<vmem>>, vector<1x128x128xf32>
    %76 = vector.shape_cast %75 : vector<1x128x128xf32> to vector<128x128xf32>
    %cst_84 = arith.constant dense<0.000000e+00> : vector<8x128xf32>
    %77 = tpu.matmul %74, %76, %cst_84 {dimension_numbers = #tpu.dot_dimension_numbers<[1], [0], [0], [1], [0, 0, 1, 1], [], []>} : vector<8x128xf32>, vector<128x128xf32>, vector<8x128xf32> -> vector<8x128xf32>
    %78 = arith.addf %71, %77 : vector<8x128xf32>
    %c2_85 = arith.constant 2 : index
    %c0_86 = arith.constant 0 : index
    %c0_87 = arith.constant 0 : index
    %79 = vector.load %arg8[%c2_85, %c0_86, %c0_87] : memref<4x8x8xf32, #tpu.memory_space<vmem>>, vector<1x8x8xf32>
    %80 = vector.shape_cast %79 : vector<1x8x8xf32> to vector<8x8xf32>
    %cst_88 = arith.constant dense<0.000000e+00> : vector<8x128xf32>
    %81 = tpu.matmul %80, %64, %cst_88 {dimension_numbers = #tpu.dot_dimension_numbers<[1], [0], [0], [1], [0, 0, 1, 1], [], []>} : vector<8x8xf32>, vector<8x128xf32>, vector<8x128xf32> -> vector<8x128xf32>
    %c2_89 = arith.constant 2 : index
    %c0_90 = arith.constant 0 : index
    %c0_91 = arith.constant 0 : index
    %82 = vector.load %arg9[%c2_89, %c0_90, %c0_91] : memref<4x128x128xf32, #tpu.memory_space<vmem>>, vector<1x128x128xf32>
    %83 = vector.shape_cast %82 : vector<1x128x128xf32> to vector<128x128xf32>
    %cst_92 = arith.constant dense<0.000000e+00> : vector<8x128xf32>
    %84 = tpu.matmul %81, %83, %cst_92 {dimension_numbers = #tpu.dot_dimension_numbers<[1], [0], [0], [1], [0, 0, 1, 1], [], []>} : vector<8x128xf32>, vector<128x128xf32>, vector<8x128xf32> -> vector<8x128xf32>
    %85 = arith.addf %78, %84 : vector<8x128xf32>
    %c3_93 = arith.constant 3 : index
    %c0_94 = arith.constant 0 : index
    %c0_95 = arith.constant 0 : index
    %86 = vector.load %arg8[%c3_93, %c0_94, %c0_95] : memref<4x8x8xf32, #tpu.memory_space<vmem>>, vector<1x8x8xf32>
    %87 = vector.shape_cast %86 : vector<1x8x8xf32> to vector<8x8xf32>
    %cst_96 = arith.constant dense<0.000000e+00> : vector<8x128xf32>
    %88 = tpu.matmul %87, %64, %cst_96 {dimension_numbers = #tpu.dot_dimension_numbers<[1], [0], [0], [1], [0, 0, 1, 1], [], []>} : vector<8x8xf32>, vector<8x128xf32>, vector<8x128xf32> -> vector<8x128xf32>
    %c3_97 = arith.constant 3 : index
    %c0_98 = arith.constant 0 : index
    %c0_99 = arith.constant 0 : index
    %89 = vector.load %arg9[%c3_97, %c0_98, %c0_99] : memref<4x128x128xf32, #tpu.memory_space<vmem>>, vector<1x128x128xf32>
    %90 = vector.shape_cast %89 : vector<1x128x128xf32> to vector<128x128xf32>
    %cst_100 = arith.constant dense<0.000000e+00> : vector<8x128xf32>
    %91 = tpu.matmul %88, %90, %cst_100 {dimension_numbers = #tpu.dot_dimension_numbers<[1], [0], [0], [1], [0, 0, 1, 1], [], []>} : vector<8x128xf32>, vector<128x128xf32>, vector<8x128xf32> -> vector<8x128xf32>
    %92 = arith.addf %85, %91 : vector<8x128xf32>
    %93 = vector.broadcast %65 : vector<1x128xf32> to vector<8x128xf32>
    %94 = arith.addf %92, %93 : vector<8x128xf32>
    %cst_101 = arith.constant 0.000000e+00 : f32
    %95 = vector.broadcast %cst_101 : f32 to vector<8x128xf32>
    %96 = arith.maximumf %94, %95 : vector<8x128xf32>
    %c0_102 = arith.constant 0 : index
    %c0_103 = arith.constant 0 : index
    %97 = vector.load %arg13[%c0_102, %c0_103] : memref<1x16xf32, #tpu.memory_space<vmem>>, vector<1x16xf32>
    %c0_104 = arith.constant 0 : index
    %c0_105 = arith.constant 0 : index
    %c0_106 = arith.constant 0 : index
    %98 = vector.load %arg11[%c0_104, %c0_105, %c0_106] : memref<4x2x8xf32, #tpu.memory_space<vmem>>, vector<1x2x8xf32>
    %99 = vector.shape_cast %98 : vector<1x2x8xf32> to vector<2x8xf32>
    %cst_107 = arith.constant dense<0.000000e+00> : vector<2x128xf32>
    %100 = tpu.matmul %99, %96, %cst_107 {dimension_numbers = #tpu.dot_dimension_numbers<[1], [0], [0], [1], [0, 0, 1, 1], [], []>} : vector<2x8xf32>, vector<8x128xf32>, vector<2x128xf32> -> vector<2x128xf32>
    %c0_108 = arith.constant 0 : index
    %c0_109 = arith.constant 0 : index
    %c0_110 = arith.constant 0 : index
    %101 = vector.load %arg12[%c0_108, %c0_109, %c0_110] : memref<4x128x16xf32, #tpu.memory_space<vmem>>, vector<1x128x16xf32>
    %102 = vector.shape_cast %101 : vector<1x128x16xf32> to vector<128x16xf32>
    %cst_111 = arith.constant dense<0.000000e+00> : vector<2x16xf32>
    %103 = tpu.matmul %100, %102, %cst_111 {dimension_numbers = #tpu.dot_dimension_numbers<[1], [0], [0], [1], [0, 0, 1, 1], [], []>} : vector<2x128xf32>, vector<128x16xf32>, vector<2x16xf32> -> vector<2x16xf32>
    %c1_112 = arith.constant 1 : index
    %c0_113 = arith.constant 0 : index
    %c0_114 = arith.constant 0 : index
    %104 = vector.load %arg11[%c1_112, %c0_113, %c0_114] : memref<4x2x8xf32, #tpu.memory_space<vmem>>, vector<1x2x8xf32>
    %105 = vector.shape_cast %104 : vector<1x2x8xf32> to vector<2x8xf32>
    %cst_115 = arith.constant dense<0.000000e+00> : vector<2x128xf32>
    %106 = tpu.matmul %105, %96, %cst_115 {dimension_numbers = #tpu.dot_dimension_numbers<[1], [0], [0], [1], [0, 0, 1, 1], [], []>} : vector<2x8xf32>, vector<8x128xf32>, vector<2x128xf32> -> vector<2x128xf32>
    %c1_116 = arith.constant 1 : index
    %c0_117 = arith.constant 0 : index
    %c0_118 = arith.constant 0 : index
    %107 = vector.load %arg12[%c1_116, %c0_117, %c0_118] : memref<4x128x16xf32, #tpu.memory_space<vmem>>, vector<1x128x16xf32>
    %108 = vector.shape_cast %107 : vector<1x128x16xf32> to vector<128x16xf32>
    %cst_119 = arith.constant dense<0.000000e+00> : vector<2x16xf32>
    %109 = tpu.matmul %106, %108, %cst_119 {dimension_numbers = #tpu.dot_dimension_numbers<[1], [0], [0], [1], [0, 0, 1, 1], [], []>} : vector<2x128xf32>, vector<128x16xf32>, vector<2x16xf32> -> vector<2x16xf32>
    %110 = arith.addf %103, %109 : vector<2x16xf32>
    %c2_120 = arith.constant 2 : index
    %c0_121 = arith.constant 0 : index
    %c0_122 = arith.constant 0 : index
    %111 = vector.load %arg11[%c2_120, %c0_121, %c0_122] : memref<4x2x8xf32, #tpu.memory_space<vmem>>, vector<1x2x8xf32>
    %112 = vector.shape_cast %111 : vector<1x2x8xf32> to vector<2x8xf32>
    %cst_123 = arith.constant dense<0.000000e+00> : vector<2x128xf32>
    %113 = tpu.matmul %112, %96, %cst_123 {dimension_numbers = #tpu.dot_dimension_numbers<[1], [0], [0], [1], [0, 0, 1, 1], [], []>} : vector<2x8xf32>, vector<8x128xf32>, vector<2x128xf32> -> vector<2x128xf32>
    %c2_124 = arith.constant 2 : index
    %c0_125 = arith.constant 0 : index
    %c0_126 = arith.constant 0 : index
    %114 = vector.load %arg12[%c2_124, %c0_125, %c0_126] : memref<4x128x16xf32, #tpu.memory_space<vmem>>, vector<1x128x16xf32>
    %115 = vector.shape_cast %114 : vector<1x128x16xf32> to vector<128x16xf32>
    %cst_127 = arith.constant dense<0.000000e+00> : vector<2x16xf32>
    %116 = tpu.matmul %113, %115, %cst_127 {dimension_numbers = #tpu.dot_dimension_numbers<[1], [0], [0], [1], [0, 0, 1, 1], [], []>} : vector<2x128xf32>, vector<128x16xf32>, vector<2x16xf32> -> vector<2x16xf32>
    %117 = arith.addf %110, %116 : vector<2x16xf32>
    %c3_128 = arith.constant 3 : index
    %c0_129 = arith.constant 0 : index
    %c0_130 = arith.constant 0 : index
    %118 = vector.load %arg11[%c3_128, %c0_129, %c0_130] : memref<4x2x8xf32, #tpu.memory_space<vmem>>, vector<1x2x8xf32>
    %119 = vector.shape_cast %118 : vector<1x2x8xf32> to vector<2x8xf32>
    %cst_131 = arith.constant dense<0.000000e+00> : vector<2x128xf32>
    %120 = tpu.matmul %119, %96, %cst_131 {dimension_numbers = #tpu.dot_dimension_numbers<[1], [0], [0], [1], [0, 0, 1, 1], [], []>} : vector<2x8xf32>, vector<8x128xf32>, vector<2x128xf32> -> vector<2x128xf32>
    %c3_132 = arith.constant 3 : index
    %c0_133 = arith.constant 0 : index
    %c0_134 = arith.constant 0 : index
    %121 = vector.load %arg12[%c3_132, %c0_133, %c0_134] : memref<4x128x16xf32, #tpu.memory_space<vmem>>, vector<1x128x16xf32>
    %122 = vector.shape_cast %121 : vector<1x128x16xf32> to vector<128x16xf32>
    %cst_135 = arith.constant dense<0.000000e+00> : vector<2x16xf32>
    %123 = tpu.matmul %120, %122, %cst_135 {dimension_numbers = #tpu.dot_dimension_numbers<[1], [0], [0], [1], [0, 0, 1, 1], [], []>} : vector<2x128xf32>, vector<128x16xf32>, vector<2x16xf32> -> vector<2x16xf32>
    %124 = arith.addf %117, %123 : vector<2x16xf32>
    %125 = vector.broadcast %97 : vector<1x16xf32> to vector<2x16xf32>
    %126 = arith.addf %124, %125 : vector<2x16xf32>
    %127 = vector.extract_strided_slice %126 {offsets = [0, 0], sizes = [2, 8], strides = [1, 1]} : vector<2x16xf32> to vector<2x8xf32>
    %128 = vector.extract_strided_slice %126 {offsets = [0, 8], sizes = [2, 8], strides = [1, 1]} : vector<2x16xf32> to vector<2x8xf32>
    %cst_136 = arith.constant 5.000000e-01 : f32
    %129 = vector.broadcast %cst_136 : f32 to vector<2x8xf32>
    %130 = arith.mulf %129, %128 : vector<2x8xf32>
    %131 = math.exp %130 : vector<2x8xf32>
    %c0_137 = arith.constant 0 : index
    %c0_138 = arith.constant 0 : index
    %132 = vector.load %arg14[%c0_137, %c0_138] : memref<2x8xf32, #tpu.memory_space<vmem>>, vector<2x8xf32>
    %133 = arith.mulf %132, %131 : vector<2x8xf32>
    %134 = arith.addf %127, %133 : vector<2x8xf32>
    %c0_139 = arith.constant 0 : index
    %c0_140 = arith.constant 0 : index
    %135 = vector.load %arg15[%c0_139, %c0_140] : memref<2x8xf32, #tpu.memory_space<vmem>>, vector<2x8xf32>
    tpu.vector_store %arg15[%c0_139, %c0_140], %134 {strides = array<i32>} : memref<2x8xf32, #tpu.memory_space<vmem>>, vector<2x8xf32>,
    %c0_141 = arith.constant 0 : index
    %c0_142 = arith.constant 0 : index
    %136 = vector.load %arg16[%c0_141, %c0_142] : memref<2x8xf32, #tpu.memory_space<vmem>>, vector<2x8xf32>
    tpu.vector_store %arg16[%c0_141, %c0_142], %127 {strides = array<i32>} : memref<2x8xf32, #tpu.memory_space<vmem>>, vector<2x8xf32>,
    %c0_143 = arith.constant 0 : index
    %c0_144 = arith.constant 0 : index
    %137 = vector.load %arg17[%c0_143, %c0_144] : memref<2x8xf32, #tpu.memory_space<vmem>>, vector<2x8xf32>
    tpu.vector_store %arg17[%c0_143, %c0_144], %128 {strides = array<i32>} : memref<2x8xf32, #tpu.memory_space<vmem>>, vector<2x8xf32>,
    return
  }
  func.func @transform_0(%arg0: i32) -> (i32, i32) {
    %c0_i32 = arith.constant 0 : i32
    %c0_i32_0 = arith.constant 0 : i32
    %c0_i32_1 = arith.constant 0 : i32
    return %c0_i32, %c0_i32_0 : i32, i32
  }
  func.func @transform_1(%arg0: i32) -> (i32, i32, i32) {
    %c0_i32 = arith.constant 0 : i32
    %c0_i32_0 = arith.constant 0 : i32
    %c0_i32_1 = arith.constant 0 : i32
    %c0_i32_2 = arith.constant 0 : i32
    return %c0_i32, %c0_i32_0, %c0_i32_1 : i32, i32, i32
  }
  func.func @transform_2(%arg0: i32) -> (i32, i32, i32) {
    %c0_i32 = arith.constant 0 : i32
    %c0_i32_0 = arith.constant 0 : i32
    %c0_i32_1 = arith.constant 0 : i32
    %c0_i32_2 = arith.constant 0 : i32
    return %c0_i32, %c0_i32_0, %c0_i32_1 : i32, i32, i32
  }
  func.func @transform_3(%arg0: i32) -> (i32, i32) {
    %c0_i32 = arith.constant 0 : i32
    %c0_i32_0 = arith.constant 0 : i32
    %c0_i32_1 = arith.constant 0 : i32
    return %c0_i32, %c0_i32_0 : i32, i32
  }
  func.func @transform_4(%arg0: i32) -> (i32, i32, i32) {
    %c0_i32 = arith.constant 0 : i32
    %c0_i32_0 = arith.constant 0 : i32
    %c0_i32_1 = arith.constant 0 : i32
    %c0_i32_2 = arith.constant 0 : i32
    return %c0_i32, %c0_i32_0, %c0_i32_1 : i32, i32, i32
  }
  func.func @transform_5(%arg0: i32) -> (i32, i32, i32) {
    %c0_i32 = arith.constant 0 : i32
    %c0_i32_0 = arith.constant 0 : i32
    %c0_i32_1 = arith.constant 0 : i32
    %c0_i32_2 = arith.constant 0 : i32
    return %c0_i32, %c0_i32_0, %c0_i32_1 : i32, i32, i32
  }
  func.func @transform_6(%arg0: i32) -> (i32, i32) {
    %c0_i32 = arith.constant 0 : i32
    %c0_i32_0 = arith.constant 0 : i32
    %c0_i32_1 = arith.constant 0 : i32
    return %c0_i32, %c0_i32_0 : i32, i32
  }
  func.func @transform_7(%arg0: i32) -> (i32, i32, i32) {
    %c0_i32 = arith.constant 0 : i32
    %c0_i32_0 = arith.constant 0 : i32
    %c0_i32_1 = arith.constant 0 : i32
    %c0_i32_2 = arith.constant 0 : i32
    return %c0_i32, %c0_i32_0, %c0_i32_1 : i32, i32, i32
  }
  func.func @transform_8(%arg0: i32) -> (i32, i32, i32) {
    %c0_i32 = arith.constant 0 : i32
    %c0_i32_0 = arith.constant 0 : i32
    %c0_i32_1 = arith.constant 0 : i32
    %c0_i32_2 = arith.constant 0 : i32
    return %c0_i32, %c0_i32_0, %c0_i32_1 : i32, i32, i32
  }
  func.func @transform_9(%arg0: i32) -> (i32, i32) {
    %c0_i32 = arith.constant 0 : i32
    %c0_i32_0 = arith.constant 0 : i32
    %c0_i32_1 = arith.constant 0 : i32
    return %c0_i32, %c0_i32_0 : i32, i32
  }
  func.func @transform_10(%arg0: i32) -> (i32, i32, i32) {
    %c0_i32 = arith.constant 0 : i32
    %c0_i32_0 = arith.constant 0 : i32
    %c0_i32_1 = arith.constant 0 : i32
    %c0_i32_2 = arith.constant 0 : i32
    return %c0_i32, %c0_i32_0, %c0_i32_1 : i32, i32, i32
  }
  func.func @transform_11(%arg0: i32) -> (i32, i32, i32) {
    %c0_i32 = arith.constant 0 : i32
    %c0_i32_0 = arith.constant 0 : i32
    %c0_i32_1 = arith.constant 0 : i32
    %c0_i32_2 = arith.constant 0 : i32
    return %c0_i32, %c0_i32_0, %c0_i32_1 : i32, i32, i32
  }
  func.func @transform_12(%arg0: i32) -> (i32, i32) {
    %c0_i32 = arith.constant 0 : i32
    %c0_i32_0 = arith.constant 0 : i32
    %c0_i32_1 = arith.constant 0 : i32
    return %c0_i32, %c0_i32_0 : i32, i32
  }
  func.func @transform_13(%arg0: i32) -> (i32, i32) {
    %c0_i32 = arith.constant 0 : i32
    %c0_i32_0 = arith.constant 0 : i32
    %c0_i32_1 = arith.constant 0 : i32
    return %c0_i32, %c0_i32_0 : i32, i32
  }
  func.func @transform_14(%arg0: i32) -> (i32, i32) {
    %c0_i32 = arith.constant 0 : i32
    %c0_i32_0 = arith.constant 0 : i32
    %c0_i32_1 = arith.constant 0 : i32
    return %c0_i32, %c0_i32_0 : i32, i32
  }
  func.func @transform_15(%arg0: i32) -> (i32, i32) {
    %c0_i32 = arith.constant 0 : i32
    %c0_i32_0 = arith.constant 0 : i32
    %c0_i32_1 = arith.constant 0 : i32
    return %c0_i32, %c0_i32_0 : i32, i32
  }
  func.func @transform_16(%arg0: i32) -> (i32, i32) {
    %c0_i32 = arith.constant 0 : i32
    %c0_i32_0 = arith.constant 0 : i32
    %c0_i32_1 = arith.constant 0 : i32
    return %c0_i32, %c0_i32_0 : i32, i32
  }
}

</mosaic_0001>

<bundles_post_ra>
// kernel: tile.19
= control target key start
LH: loop header
LB: loop body
LE: loop exit
PB: predicated region body
PF: predicated region fallthrough
CT: control target
= control target key end

     0   :  { %s7_s6 = smov 3  ;;  %s14_s9 = smov 3  ;;  %vm4_vm0 = vcmask 261120   ;;  %vm11_vm1 = vcmask 1048320   ;;  %vm18_vm2 = vcmask 785920   ;;  %vm25_vm3 = vcmask 523520   ;;  %s79_s0 = inlined_call_operand.vmem [shape: f32[8,32], index: 0, kind: input, shape index: {}]   ;;  %s80_s1 = inlined_call_operand.vmem [shape: f32[1,256], index: 1, kind: output, shape index: {}]  }
   0x1   :  { %v41_v0 = vld [vmem:[%s79_s0 + $0x3] ss:$4 sm:%s7_s6]   ;;  %s48_s10 = smov 96   ;;  %s21_s11 = smov 3  ;;  %v42_v1 = vld [vmem:[%s79_s0 + $0x2] ss:$4 sm:%s14_s9]  }
   0x2   :  { %9 = vrot.lane.b32.xlu0 %v41_v0, %s48_s10  ;;  %v43_v2 = vld [vmem:[%s79_s0 + $0x1] ss:$4 sm:%s21_s11]   ;;  %s2_s16 = smov 3  ;;  %s49_s17 = smov 32  }
   0x3   :  { %23 = vrot.lane.b32.xlu1 %v43_v2, %s49_s17  ;;  %v3_v3 = vld [vmem:[%s79_s0] ss:$4 sm:%s2_s16]   ;;  %s50_s0 = smov 64  }
   0x4   :  { %5 = vst.msk [vmem:[#allocation0] ss:$8 sm:$0x3] %vm4_vm0, %v3_v3  }
   0x6   :  { %16 = vrot.lane.b32.xlu0 %v42_v1, %s50_s0 }
  0x74   :  { %v10_v4 = vpop.permute.xlu0 %9  }
  0x75   :  { %12 = vst.msk [vmem:[#allocation0] ss:$8 sm:$0x3] %vm11_vm1, %v10_v4   ;;  %v24_v5 = vpop.permute.xlu1 %23  }
  0x78   :  { %v17_v6 = vpop.permute.xlu0 %16  }
  0x79   :  { %19 = vst.msk [vmem:[#allocation0] ss:$8 sm:$0x3] %vm18_vm2, %v17_v6  }
  0x7a   :  { %26 = vst.msk [vmem:[#allocation0] ss:$8 sm:$0x3] %vm25_vm3, %v24_v5  }
  0x81   :  { %v31_v7 = vld [vmem:[#allocation0] sm:$0x1]  ;;  %v36_v8 = vld [vmem:[#allocation0 + $0x8] sm:$0x1] }
  0x82   :  { %34 = vst [vmem:[%s80_s1] sm:$0x1] %v31_v7  ;;  %44 = vst [vmem:[%s80_s1 + $0x1] sm:$0x1] %v36_v8 }

// kernel: tile.18
= control target key start
LH: loop header
LB: loop body
LE: loop exit
PB: predicated region body
PF: predicated region fallthrough
CT: control target
= control target key end

     0   :  { %s22_s0 = inlined_call_operand.vmem [shape: f32[32], index: 0, kind: input, shape index: {}]   ;;  %s23_s1 = inlined_call_operand.vmem [shape: f32[8,32], index: 1, kind: output, shape index: {}]  }
   0x1   :  { %v4_v0 = vld [vmem:[%s22_s0] ss:$0 sm:$0xff] }
   0x2   :  { %5 = vst [vmem:[%s23_s1] sm:$0xff] %v4_v0 }

// kernel: tile.23
= control target key start
LH: loop header
LB: loop body
LE: loop exit
PB: predicated region body
PF: predicated region fallthrough
CT: control target
= control target key end

     0   :  { %s22_s0 = inlined_call_operand.vmem [shape: f32[32], index: 0, kind: input, shape index: {}]   ;;  %s23_s1 = inlined_call_operand.vmem [shape: f32[4,32], index: 1, kind: output, shape index: {}]  }
   0x1   :  { %v4_v0 = vld [vmem:[%s22_s0] ss:$0 sm:$0xff] }
   0x2   :  { %5 = vst [vmem:[%s23_s1] sm:$0xf] %v4_v0 }

// kernel: tile.24
= control target key start
LH: loop header
LB: loop body
LE: loop exit
PB: predicated region body
PF: predicated region fallthrough
CT: control target
= control target key end

     0   :  { %vm8_vm0 = vcmask 261120   ;;  %s40_s8 = smov 32   ;;  %s41_s9 = smov 64   ;;  %vm14_vm1 = vcmask 1048320   ;;  %vm20_vm2 = vcmask 785920   ;;  %vm26_vm3 = vcmask 523520   ;;  %s58_s0 = inlined_call_operand.vmem [shape: f32[4,32], index: 0, kind: input, shape index: {}]   ;;  %s59_s1 = inlined_call_operand.vmem [shape: f32[1,128], index: 1, kind: output, shape index: {}]  }
   0x1   :  { %v5_v0 = vld [vmem:[%s58_s0] sm:$0xf]  ;;  %s39_s0 = smov 96  }
   0x2   :  { %6 = vst [vmem:[#allocation1] sm:$0xf] %v5_v0 }
   0x9   :  { %v11_v1 = vld [vmem:[#allocation1 + $0x3] sm:$0x1]   ;;  %v23_v2 = vld [vmem:[#allocation1 + $0x1] sm:$0x1]   ;;  %v7_v3 = vld [vmem:[#allocation1] sm:$0x1]  }
   0xa   :  { %12 = vrot.lane.b32.xlu0 %v11_v1, %s39_s0  ;;  %24 = vrot.lane.b32.xlu1 %v23_v2, %s40_s8  ;;  %v17_v4 = vld [vmem:[#allocation1 + $0x2] sm:$0x1]   ;;  %9 = vst.msk [vmem:[#allocation0] sm:$0x1] %vm8_vm0, %v7_v3  }
   0xe   :  { %18 = vrot.lane.b32.xlu0 %v17_v4, %s41_s9 }
  0x7c   :  { %v13_v5 = vpop.permute.xlu0 %12   ;;  %v25_v6 = vpop.permute.xlu1 %24  }
  0x7d   :  { %15 = vst.msk [vmem:[#allocation0] sm:$0x1] %vm14_vm1, %v13_v5  }
  0x80   :  { %v19_v7 = vpop.permute.xlu0 %18  }
  0x81   :  { %21 = vst.msk [vmem:[#allocation0] sm:$0x1] %vm20_vm2, %v19_v7  }
  0x82   :  { %27 = vst.msk [vmem:[#allocation0] sm:$0x1] %vm26_vm3, %v25_v6  }
  0x89   :  { %v32_v8 = vld [vmem:[#allocation0] sm:$0x1] }
  0x8a   :  { %35 = vst [vmem:[%s59_s1] sm:$0x1] %v32_v8 }

// kernel: encoder_forward.1
= control target key start
LH: loop header
LB: loop body
LE: loop exit
PB: predicated region body
PF: predicated region fallthrough
CT: control target
= control target key end

     0   :  { %s5403_s0 = inlined_call_operand.vmem [shape: f32[32,64], index: 0, kind: input, shape index: {}]   ;;  %s5404_s1 = inlined_call_operand.vmem [shape: f32[4,16,32], index: 1, kind: input, shape index: {}]   ;;  %s5405_s2 = inlined_call_operand.vmem [shape: f32[4,64,256], index: 2, kind: input, shape index: {}]   ;;  %s5406_s3 = inlined_call_operand.vmem [shape: f32[1,256], index: 3, kind: input, shape index: {}]   ;;  %s5407_s4 = inlined_call_operand.vmem [shape: f32[4,8,16], index: 4, kind: input, shape index: {}]   ;;  %s5408_s5 = inlined_call_operand.vmem [shape: f32[4,256,128], index: 5, kind: input, shape index: {}]   ;;  %s5409_s6 = inlined_call_operand.vmem [shape: f32[1,128], index: 6, kind: input, shape index: {}]   ;;  %s5410_s7 = inlined_call_operand.vmem [shape: f32[4,8,8], index: 7, kind: input, shape index: {}]   ;;  %s5411_s8 = inlined_call_operand.vmem [shape: f32[4,128,128], index: 8, kind: input, shape index: {}]   ;;  %s5412_s9 = inlined_call_operand.vmem [shape: f32[1,128], index: 9, kind: input, shape index: {}]   ;;  %s5413_s10 = inlined_call_operand.vmem [shape: f32[4,2,8], index: 10, kind: input, shape index: {}]   ;;  %s5414_s11 = inlined_call_operand.vmem [shape: f32[4,128,16], index: 11, kind: input, shape index: {}]   ;;  %s5415_s12 = inlined_call_operand.vmem [shape: f32[1,16], index: 12, kind: input, shape index: {}]   ;;  %s5416_s13 = inlined_call_operand.vmem [shape: f32[2,8], index: 13, kind: input, shape index: {}]   ;;  %s5417_s14 = inlined_call_operand.hbm [shape: f32[2,8], index: 14, kind: output, shape index: {0}]   ;;  %s5418_s15 = inlined_call_operand.hbm [shape: f32[2,8], index: 15, kind: output, shape index: {1}]   ;;  %s5419_s16 = inlined_call_operand.hbm [shape: f32[2,8], index: 16, kind: output, shape index: {2}]  }
   0x1   :  { %5421 = sst [smem:[#allocation9_spill]] %s5403_s0 }
   0x2   :  { %22 = vsyncpa [#allocation3], 0  ;;  %s5422_s23 = sld [smem:[#allocation9_spill]]  ;;  %v57_v4 = vld [vmem:[%s5404_s1] sm:$0xff]  ;;  %vm59_vm0 = vcmask 261120   ;;  %v2921_v5 = vld [vmem:[%s5404_s1 + $0x10] sm:$0xff] }
   0x3   :  { %v58_v6 = vld [vmem:[%s5404_s1 + $0x8] sm:$0xff]  ;;  %v2922_v7 = vld [vmem:[%s5404_s1 + $0x18] sm:$0xff]  ;;  %3529 = vmatprep.mubr.msk.f32.mxu0 %vm59_vm0, %v57_v4  ;;  %3540 = vmatprep.mubr.msk.f32.mxu1 %vm59_vm0, %v2921_v5  ;;  %v2939_v10 = vld [vmem:[%s5405_s2 + $0xf0] sm:$0xff] }
   0x4   :  { %v2940_v8 = vld [vmem:[%s5405_s2 + $0xf8] sm:$0xff]  ;;  %v155_v11 = vld [vmem:[%s5405_s2 + $0x70] sm:$0xff]  ;;  %v2938_v12 = vld [vmem:[%s5405_s2 + $0xe8] sm:$0xff] }
   0x5   :  { %v156_v9 = vld [vmem:[%s5405_s2 + $0x78] sm:$0xff]  ;;  %v154_v13 = vld [vmem:[%s5405_s2 + $0x68] sm:$0xff]  ;;  %v2937_v14 = vld [vmem:[%s5405_s2 + $0xe0] sm:$0xff] }
   0x6   :  { %v153_v15 = vld [vmem:[%s5405_s2 + $0x60] sm:$0xff] }
   0x8   :  { %v4051_v0 = vld [vmem:[%s5422_s23 + $0x18] sm:$0xff]  ;;  %v4056_v1 = vld [vmem:[%s5422_s23 + $0x10] sm:$0xff]  ;;  %v4065_v2 = vld [vmem:[%s5422_s23 + $0x8] sm:$0xff] }
   0x9   :  { %3521 = vmatprep.subr.mxu0 %v4051_v0  ;;  %3532 = vmatprep.subr.mxu1 %v4051_v0  ;;  %v4074_v3 = vld [vmem:[%s5422_s23] sm:$0xff] }
   0xa   :  { %3522 = vmatpush3.msra.mxu0 %v4051_v0  ;;  %3533 = vmatpush3.msra.mxu1 %v4051_v0 }
   0xb   :  { %3523 = vmatprep.subr.mxu0 %v4056_v1  ;;  %3534 = vmatprep.subr.mxu1 %v4056_v1 }
   0xc   :  { %3524 = vmatpush3.msra.mxu0 %v4056_v1  ;;  %3535 = vmatpush3.msra.mxu1 %v4056_v1 }
   0xd   :  { %3525 = vmatprep.subr.mxu0 %v4065_v2  ;;  %3536 = vmatprep.subr.mxu1 %v4065_v2 }
   0xe   :  { %3526 = vmatpush3.msra.mxu0 %v4065_v2  ;;  %3537 = vmatpush3.msra.mxu1 %v4065_v2 }
   0xf   :  { %3527 = vmatprep.subr.mxu0 %v4074_v3  ;;  %3538 = vmatprep.subr.mxu1 %v4074_v3 }
  0x10   :  { %3528 = vmatpush3.msra.mxu0 %v4074_v3  ;;  %3539 = vmatpush3.msra.mxu1 %v4074_v3 }
  0x11   :  { %3530 = vmatmul.mubr.msk.f32.vlgmr.msra.gmra.mxu0 %vm59_vm0, %v58_v6  ;;  %3541 = vmatmul.mubr.msk.f32.vlgmr.msra.gmra.mxu1 %vm59_vm0, %v2922_v7 }
  0x12   :  { %281 = vmatprep.subr.mxu0 %v2940_v8  ;;  %364 = vmatprep.subr.mxu1 %v156_v9 }
  0x13   :  { %23 = vsyncpa [#allocation5], 0  ;;  %282 = vmatpush1.msra.mxu0 %v2939_v10  ;;  %365 = vmatpush1.msra.mxu1 %v155_v11  ;;  %v2936_v16 = vld [vmem:[%s5405_s2 + $0xd8] sm:$0xff]  ;;  %v2935_v18 = vld [vmem:[%s5405_s2 + $0xd0] sm:$0xff]  ;;  %v3957_v40 = vmov 0.0   ;;  %vm258_vm1 = vcmask 523264  }
  0x14   :  { %v152_v17 = vld [vmem:[%s5405_s2 + $0x58] sm:$0xff]  ;;  %283 = vmatprep.subr.mxu0 %v2938_v12  ;;  %366 = vmatprep.subr.mxu1 %v154_v13  ;;  %v151_v19 = vld [vmem:[%s5405_s2 + $0x50] sm:$0xff]  ;;  %v2934_v20 = vld [vmem:[%s5405_s2 + $0xc8] sm:$0xff]  ;;  %vm822_vm2 = vcmask 130048   ;;  %vm3958_vm3 = vmmov 0   ;;  %vm1548_vm4 = vcmask 64512  }
  0x15   :  { %284 = vmatpush1.msra.mxu0 %v2937_v14  ;;  %367 = vmatpush1.msra.mxu1 %v153_v15  ;;  %v150_v21 = vld [vmem:[%s5405_s2 + $0x48] sm:$0xff]  ;;  %v2933_v22 = vld [vmem:[%s5405_s2 + $0xc0] sm:$0xff]  ;;  %v2932_v24 = vld [vmem:[%s5405_s2 + $0xb8] sm:$0xff]  ;;  %vm2870_vm5 = vcmask 58368  }
  0x16   :  { %285 = vmatprep.subr.mxu0 %v2936_v16  ;;  %368 = vmatprep.subr.mxu1 %v152_v17  ;;  %v149_v23 = vld [vmem:[%s5405_s2 + $0x40] sm:$0xff]  ;;  %v148_v25 = vld [vmem:[%s5405_s2 + $0x38] sm:$0xff]  ;;  %v2931_v26 = vld [vmem:[%s5405_s2 + $0xb0] sm:$0xff] }
  0x17   :  { %286 = vmatpush1.msra.mxu0 %v2935_v18  ;;  %369 = vmatpush1.msra.mxu1 %v151_v19  ;;  %v147_v27 = vld [vmem:[%s5405_s2 + $0x30] sm:$0xff]  ;;  %v2930_v28 = vld [vmem:[%s5405_s2 + $0xa8] sm:$0xff]  ;;  %v2929_v30 = vld [vmem:[%s5405_s2 + $0xa0] sm:$0xff] }
  0x18   :  { %287 = vmatprep.subr.mxu0 %v2934_v20  ;;  %370 = vmatprep.subr.mxu1 %v150_v21  ;;  %v146_v29 = vld [vmem:[%s5405_s2 + $0x28] sm:$0xff]  ;;  %v145_v31 = vld [vmem:[%s5405_s2 + $0x20] sm:$0xff]  ;;  %v2928_v32 = vld [vmem:[%s5405_s2 + $0x98] sm:$0xff] }
  0x19   :  { %288 = vmatpush1.msra.mxu0 %v2933_v22  ;;  %371 = vmatpush1.msra.mxu1 %v149_v23  ;;  %v144_v33 = vld [vmem:[%s5405_s2 + $0x18] sm:$0xff]  ;;  %v2927_v34 = vld [vmem:[%s5405_s2 + $0x90] sm:$0xff]  ;;  %v2926_v35 = vld [vmem:[%s5405_s2 + $0x88] sm:$0xff] }
  0x1a   :  { %289 = vmatprep.subr.mxu0 %v2932_v24  ;;  %372 = vmatprep.subr.mxu1 %v148_v25  ;;  %v143_v36 = vld [vmem:[%s5405_s2 + $0x10] sm:$0xff]  ;;  %v2925_v37 = vld [vmem:[%s5405_s2 + $0x80] sm:$0xff]  ;;  %v142_v38 = vld [vmem:[%s5405_s2 + $0x8] sm:$0xff] }
  0x1b   :  { %290 = vmatpush1.msra.mxu0 %v2931_v26  ;;  %373 = vmatpush1.msra.mxu1 %v147_v27  ;;  %v141_v39 = vld [vmem:[%s5405_s2] sm:$0xff]  ;;  %v2964_v41 = vld [vmem:[%s5405_s2 + $0x178] sm:$0xff]  ;;  %v2963_v46 = vld [vmem:[%s5405_s2 + $0x170] sm:$0xff] }
  0x1c   :  { %291 = vmatprep.subr.mxu0 %v2930_v28  ;;  %374 = vmatprep.subr.mxu1 %v146_v29  ;;  %v2945_v47 = vld [vmem:[%s5404_s1 + $0x20] sm:$0xff]  ;;  %v2962_v48 = vld [vmem:[%s5405_s2 + $0x168] sm:$0xff]  ;;  %v2967_v50 = vld [vmem:[%s5404_s1 + $0x30] sm:$0xff] }
  0x1d   :  { %292 = vmatpush1.msra.mxu0 %v2929_v30  ;;  %375 = vmatpush1.msra.mxu1 %v145_v31  ;;  %v2946_v49 = vld [vmem:[%s5404_s1 + $0x28] sm:$0xff]  ;;  %v2961_v51 = vld [vmem:[%s5405_s2 + $0x160] sm:$0xff]  ;;  %v2960_v52 = vld [vmem:[%s5405_s2 + $0x158] sm:$0xff] }
  0x1e   :  { %293 = vmatprep.subr.mxu0 %v2928_v32  ;;  %376 = vmatprep.subr.mxu1 %v144_v33  ;;  %v2968_v53 = vld [vmem:[%s5404_s1 + $0x38] sm:$0xff]  ;;  %v2959_v54 = vld [vmem:[%s5405_s2 + $0x150] sm:$0xff]  ;;  %v2958_v55 = vld [vmem:[%s5405_s2 + $0x148] sm:$0xff] }
  0x1f   :  { %294 = vmatpush1.msra.mxu0 %v2927_v34  ;;  %377 = vmatpush1.msra.mxu1 %v143_v36  ;;  %v2957_v56 = vld [vmem:[%s5405_s2 + $0x140] sm:$0xff]  ;;  %v2986_v57 = vld [vmem:[%s5405_s2 + $0x1f8] sm:$0xff]  ;;  %v2985_v59 = vld [vmem:[%s5405_s2 + $0x1f0] sm:$0xff] }
  0x20   :  { %295 = vmatprep.subr.mxu0 %v2926_v35  ;;  %378 = vmatprep.subr.mxu1 %v142_v38  ;;  %v2956_v58 = vld [vmem:[%s5405_s2 + $0x138] sm:$0xff]  ;;  %v2955_v60 = vld [vmem:[%s5405_s2 + $0x130] sm:$0xff]  ;;  %v2984_v61 = vld [vmem:[%s5405_s2 + $0x1e8] sm:$0xff] }
  0x21   :  { %296 = vmatpush1.msra.mxu0 %v2925_v37  ;;  %329 = vmatprep.mubr.f32.mxu0 %v3957_v40  ;;  %v2954_v62 = vld [vmem:[%s5405_s2 + $0x128] sm:$0xff]  ;;  %v2983_v63 = vld [vmem:[%s5405_s2 + $0x1e0] sm:$0xff]  ;;  %v2951_v4 = vld [vmem:[%s5405_s2 + $0x110] sm:$0xff] }
  0x22   :  { %379 = vmatpush1.msra.mxu1 %v141_v39  ;;  %412 = vmatprep.mubr.f32.mxu1 %v3957_v40  ;;  %v2980_v5 = vld [vmem:[%s5405_s2 + $0x1c8] sm:$0xff]  ;;  %v2979_v7 = vld [vmem:[%s5405_s2 + $0x1c0] sm:$0xff]  ;;  %v2978_v9 = vld [vmem:[%s5405_s2 + $0x1b8] sm:$0xff] }
  0x23   :  { %3543 = vmatprep.subr.mxu0 %v4051_v0  ;;  %548 = vmatprep.subr.mxu1 %v2964_v41  ;;  %v2950_v6 = vld [vmem:[%s5405_s2 + $0x108] sm:$0xff]  ;;  %v2949_v8 = vld [vmem:[%s5405_s2 + $0x100] sm:$0xff]  ;;  %v2977_v10 = vld [vmem:[%s5405_s2 + $0x1b0] sm:$0xff] }
  0x24   :  { %v2976_v11 = vld [vmem:[%s5405_s2 + $0x1a8] sm:$0xff]  ;;  %v2975_v12 = vld [vmem:[%s5405_s2 + $0x1a0] sm:$0xff]  ;;  %v2974_v13 = vld [vmem:[%s5405_s2 + $0x198] sm:$0xff] }
  0x25   :  { %v2973_v14 = vld [vmem:[%s5405_s2 + $0x190] sm:$0xff]  ;;  %v2972_v15 = vld [vmem:[%s5405_s2 + $0x188] sm:$0xff]  ;;  %v2971_v16 = vld [vmem:[%s5405_s2 + $0x180] sm:$0xff] }
  0x26   :  { %v928_v25 = vld [vmem:[%s5408_s5 + $0xf8] sm:$0xff]  ;;  %v927_v27 = vld [vmem:[%s5408_s5 + $0xf0] sm:$0xff]  ;;  %v926_v29 = vld [vmem:[%s5408_s5 + $0xe8] sm:$0xff] }
  0x27   :  { %v912_v26 = vld [vmem:[%s5408_s5 + $0x78] sm:$0xff]  ;;  %v911_v28 = vld [vmem:[%s5408_s5 + $0x70] sm:$0xff]  ;;  %v910_v30 = vld [vmem:[%s5408_s5 + $0x68] sm:$0xff] }
  0x28   :  { %v925_v31 = vld [vmem:[%s5408_s5 + $0xe0] sm:$0xff]  ;;  %v924_v33 = vld [vmem:[%s5408_s5 + $0xd8] sm:$0xff]  ;;  %v923_v35 = vld [vmem:[%s5408_s5 + $0xd0] sm:$0xff] }
  0x29   :  { %v909_v32 = vld [vmem:[%s5408_s5 + $0x60] sm:$0xff]  ;;  %v908_v34 = vld [vmem:[%s5408_s5 + $0x58] sm:$0xff]  ;;  %v907_v36 = vld [vmem:[%s5408_s5 + $0x50] sm:$0xff] }
  0x2a   :  { %v922_v37 = vld [vmem:[%s5408_s5 + $0xc8] sm:$0xff]  ;;  %v921_v39 = vld [vmem:[%s5408_s5 + $0xc0] sm:$0xff] }
  0x2b   :  { %v906_v38 = vld [vmem:[%s5408_s5 + $0x48] sm:$0xff]  ;;  %v905_v41 = vld [vmem:[%s5408_s5 + $0x40] sm:$0xff] }
  0xd1   :  { %v3531_v42 = vpop.f32.mrf.mxu0  ;;  %v3542_v43 = vpop.f32.mrf.mxu1 }
  0xd3   :  { %v132_v44 = vpop.f32.mrf.mxu0  ;;  %v232_v45 = vpop.f32.mrf.mxu1 }
  0xd4   :  { %2941 = vmatmul.mubr.msk.f32.vlgmr.msra.gmra.mxu0 %vm258_vm1, %v232_v45  ;;  %2943 = vmatmul.mubr.msk.f32.vlgmr.msra.gmra.mxu1 %vm258_vm1, %v132_v44  ;;  %v919_v44 = vld [vmem:[%s5408_s5 + $0xb0] sm:$0xff] }
  0xd5   :  { %3544 = vmatpush3.msra.mxu0 %v4051_v0  ;;  %335 = vmatprep.mubr.f32.mxu0 %v3957_v40  ;;  %v903_v45 = vld [vmem:[%s5408_s5 + $0x30] sm:$0xff] }
  0xd6   :  { %3545 = vmatprep.subr.mxu0 %v4056_v1  ;;  %418 = vmatprep.mubr.f32.mxu1 %v3957_v40 }
  0xd7   :  { %3546 = vmatpush3.msra.mxu0 %v4056_v1  ;;  %549 = vmatpush1.msra.mxu1 %v2963_v46  ;;  %v918_v46 = vld [vmem:[%s5408_s5 + $0xa8] sm:$0xff] }
  0xd8   :  { %3547 = vmatprep.subr.mxu0 %v4065_v2  ;;  %2942 = vmatmul.mubr.msk.f32.gmra.mxu0 %vm258_vm1, %v3542_v43  ;;  %v904_v43 = vld [vmem:[%s5408_s5 + $0x38] sm:$0xff] }
  0xd9   :  { %2944 = vmatmul.mubr.msk.f32.gmra.mxu1 %vm258_vm1, %v3531_v42  ;;  %3548 = vmatpush3.msra.mxu0 %v4065_v2  ;;  %v920_v42 = vld [vmem:[%s5408_s5 + $0xb8] sm:$0xff] }
  0xda   :  { %3549 = vmatprep.subr.mxu0 %v4074_v3  ;;  %3551 = vmatprep.mubr.msk.f32.mxu0 %vm59_vm0, %v2945_v47  ;;  %v902_v47 = vld [vmem:[%s5408_s5 + $0x28] sm:$0xff] }
  0xdb   :  { %3550 = vmatpush3.msra.mxu0 %v4074_v3  ;;  %550 = vmatprep.subr.mxu1 %v2962_v48  ;;  %v917_v48 = vld [vmem:[%s5408_s5 + $0xa0] sm:$0xff] }
  0xdc   :  { %3554 = vmatprep.subr.mxu0 %v4051_v0  ;;  %3552 = vmatmul.mubr.msk.f32.vlgmr.msra.gmra.mxu0 %vm59_vm0, %v2946_v49  ;;  %v901_v49 = vld [vmem:[%s5408_s5 + $0x20] sm:$0xff] }
  0xdd   :  { %3555 = vmatpush3.msra.mxu0 %v4051_v0  ;;  %3562 = vmatprep.mubr.msk.f32.mxu0 %vm59_vm0, %v2967_v50  ;;  %v2953_v0 = vld [vmem:[%s5405_s2 + $0x120] sm:$0xff]  ;;  %v916_v50 = vld [vmem:[%s5408_s5 + $0x98] sm:$0xff] }
  0xde   :  { %3556 = vmatprep.subr.mxu0 %v4056_v1  ;;  %551 = vmatpush1.msra.mxu1 %v2961_v51  ;;  %v900_v51 = vld [vmem:[%s5408_s5 + $0x18] sm:$0xff] }
  0xdf   :  { %3557 = vmatpush3.msra.mxu0 %v4056_v1  ;;  %552 = vmatprep.subr.mxu1 %v2960_v52  ;;  %v2982_v1 = vld [vmem:[%s5405_s2 + $0x1d8] sm:$0xff]  ;;  %v915_v52 = vld [vmem:[%s5408_s5 + $0x90] sm:$0xff] }
  0xe0   :  { %3558 = vmatprep.subr.mxu0 %v4065_v2  ;;  %596 = vmatprep.mubr.f32.mxu1 %v3957_v40 }
  0xe1   :  { %3559 = vmatpush3.msra.mxu0 %v4065_v2  ;;  %553 = vmatpush1.msra.mxu1 %v2959_v54  ;;  %v2952_v2 = vld [vmem:[%s5405_s2 + $0x118] sm:$0xff] }
  0xe2   :  { %3560 = vmatprep.subr.mxu0 %v4074_v3  ;;  %554 = vmatprep.subr.mxu1 %v2958_v55 }
  0xe3   :  { %3561 = vmatpush3.msra.mxu0 %v4074_v3  ;;  %555 = vmatpush1.msra.mxu1 %v2957_v56  ;;  %v2981_v3 = vld [vmem:[%s5405_s2 + $0x1d0] sm:$0xff] }
  0xe4   :  { %3563 = vmatmul.mubr.msk.f32.vlgmr.msra.gmra.mxu0 %vm59_vm0, %v2968_v53  ;;  %736 = vmatprep.subr.mxu0 %v2986_v57  ;;  %v899_v53 = vld [vmem:[%s5408_s5 + $0x10] sm:$0xff] }
  0xe5   :  { %784 = vmatprep.mubr.f32.mxu0 %v3957_v40  ;;  %556 = vmatprep.subr.mxu1 %v2956_v58 }
  0xe6   :  { %737 = vmatpush1.msra.mxu0 %v2985_v59  ;;  %557 = vmatpush1.msra.mxu1 %v2955_v60  ;;  %v802_v60 = vlaneseq }
  0xe7   :  { %738 = vmatprep.subr.mxu0 %v2984_v61  ;;  %558 = vmatprep.subr.mxu1 %v2954_v62 }
  0xe8   :  { %739 = vmatpush1.msra.mxu0 %v2983_v63  ;;  %559 = vmatpush1.msra.mxu1 %v2953_v0  ;;  %v803_v62 = vshrl.u32 %v802_v60, 7  ;;  %v3009_v60 = vld [vmem:[%s5408_s5 + $0x188] sm:$0xff] }
  0xe9   :  { %740 = vmatprep.subr.mxu0 %v2982_v1  ;;  %560 = vmatprep.subr.mxu1 %v2952_v2 }
  0xea   :  { %741 = vmatpush1.msra.mxu0 %v2981_v3  ;;  %561 = vmatpush1.msra.mxu1 %v2951_v4  ;;  %v808_v2 = vsub.s32 1, %v803_v62 }
  0xeb   :  { %742 = vmatprep.subr.mxu0 %v2980_v5  ;;  %562 = vmatprep.subr.mxu1 %v2950_v6  ;;  %v804_v5 = vsub.s32 0, %v803_v62  ;;  %v3008_v62 = vld [vmem:[%s5408_s5 + $0x180] sm:$0xff] }
  0xec   :  { %743 = vmatpush1.msra.mxu0 %v2979_v7  ;;  %563 = vmatpush1.msra.mxu1 %v2949_v8 }
  0xed   :  { %744 = vmatprep.subr.mxu0 %v2978_v9 }
  0xee   :  { %745 = vmatpush1.msra.mxu0 %v2977_v10  ;;  %v56_v10 = vld [vmem:[%s5406_s3] sm:$0x3] }
  0xef   :  { %746 = vmatprep.subr.mxu0 %v2976_v11 }
  0xf0   :  { %747 = vmatpush1.msra.mxu0 %v2975_v12 }
  0xf1   :  { %748 = vmatprep.subr.mxu0 %v2974_v13 }
  0xf2   :  { %749 = vmatpush1.msra.mxu0 %v2973_v14 }
  0xf3   :  { %750 = vmatprep.subr.mxu0 %v2972_v15  ;;  %v809_v15 = vrot.slane %v56_v10, %v808_v2  ;;  %v913_v2 = vld [vmem:[%s5408_s5 + $0x80] sm:$0xff] }
  0xf4   :  { %751 = vmatpush1.msra.mxu0 %v2971_v16 }
  0xf5   :  { %3264 = vmatprep.subr.mxu0 %v928_v25 }
 0x194   :  { %v4334_v17 = vpop.f32.mrf.mxu0  ;;  %v414_v54 = vpop.f32.mrf.mxu1 }
 0x195   :  { %v415_v3 = vadd.f32 %v414_v54, %v4334_v17  ;;  %v3012_v54 = vld [vmem:[%s5408_s5 + $0x1a0] sm:$0xff] }
 0x196   :  { %v4336_v18 = vpop.f32.mrf.mxu0  ;;  %v416_v55 = vpop.f32.mrf.mxu1 }
 0x197   :  { %v417_v0 = vadd.f32 %v416_v55, %v4336_v18  ;;  %v2996_v55 = vld [vmem:[%s5408_s5 + $0x120] sm:$0xff] }
 0x198   :  { %v4338_v19 = vpop.f32.mrf.mxu0 }
 0x199   :  { %v420_v56 = vpop.f32.mrf.mxu1 }
 0x19a   :  { %v4340_v20 = vpop.f32.mrf.mxu0  ;;  %v421_v1 = vadd.f32 %v420_v56, %v4338_v19  ;;  %v805_v19 = vrot.slane %v56_v10, %v804_v5  ;;  %v3011_v56 = vld [vmem:[%s5408_s5 + $0x198] sm:$0xff]  ;;  %v3040_v10 = vld [vmem:[%s5408_s5 + $0x270] sm:$0xff] }
 0x19b   :  { %v422_v57 = vpop.f32.mrf.mxu1 }
 0x19c   :  { %v3553_v21 = vpop.f32.mrf.mxu0  ;;  %v423_v7 = vadd.f32 %v422_v57, %v4340_v20  ;;  %v2995_v57 = vld [vmem:[%s5408_s5 + $0x118] sm:$0xff] }
 0x19e   :  { %v500_v22 = vpop.f32.mrf.mxu0 }
 0x19f   :  { %2965 = vmatmul.mubr.msk.f32.vlgmr.msra.gmra.mxu1 %vm258_vm1, %v500_v22 }
 0x1a0   :  { %602 = vmatprep.mubr.f32.mxu1 %v3957_v40 }
 0x1a3   :  { %2966 = vmatmul.mubr.msk.f32.gmra.mxu1 %vm258_vm1, %v3553_v21 }
 0x1a4   :  { %v3564_v23 = vpop.f32.mrf.mxu0  ;;  %890 = vmatprep.mubr.f32.mxu1 %v3957_v40 }
 0x1a6   :  { %v688_v24 = vpop.f32.mrf.mxu0 }
 0x1a7   :  { %2987 = vmatmul.mubr.msk.f32.vlgmr.msra.gmra.mxu0 %vm258_vm1, %v688_v24 }
 0x1a8   :  { %790 = vmatprep.mubr.f32.mxu0 %v3957_v40  ;;  %3265 = vmatpush3.msra.mxu0 %v912_v26 }
 0x1a9   :  { %3266 = vmatprep.subr.mxu0 %v927_v27 }
 0x1aa   :  { %3267 = vmatpush3.msra.mxu0 %v911_v28 }
 0x1ab   :  { %2988 = vmatmul.mubr.msk.f32.gmra.mxu0 %vm258_vm1, %v3564_v23  ;;  %3268 = vmatprep.subr.mxu0 %v926_v29  ;;  %v821_v29 = vld [vmem:[%s5407_s4] sm:$0xff] }
 0x1ac   :  { %3269 = vmatpush3.msra.mxu0 %v910_v30  ;;  %v2990_v30 = vld [vmem:[%s5407_s4 + $0x8] sm:$0xff] }
 0x1ad   :  { %3270 = vmatprep.subr.mxu0 %v925_v31  ;;  %v3023_v31 = vld [vmem:[%s5408_s5 + $0x1f8] sm:$0xff] }
 0x1ae   :  { %3271 = vmatpush3.msra.mxu0 %v909_v32  ;;  %v3007_v32 = vld [vmem:[%s5408_s5 + $0x178] sm:$0xff] }
 0x1af   :  { %3272 = vmatprep.subr.mxu0 %v924_v33  ;;  %v3022_v33 = vld [vmem:[%s5408_s5 + $0x1f0] sm:$0xff] }
 0x1b0   :  { %3273 = vmatpush3.msra.mxu0 %v908_v34  ;;  %v3006_v34 = vld [vmem:[%s5408_s5 + $0x170] sm:$0xff] }
 0x1b1   :  { %3274 = vmatprep.subr.mxu0 %v923_v35  ;;  %v3021_v35 = vld [vmem:[%s5408_s5 + $0x1e8] sm:$0xff] }
 0x1b2   :  { %3275 = vmatpush3.msra.mxu0 %v907_v36  ;;  %v3005_v36 = vld [vmem:[%s5408_s5 + $0x168] sm:$0xff] }
 0x1b3   :  { %3276 = vmatprep.subr.mxu0 %v922_v37  ;;  %v3020_v37 = vld [vmem:[%s5408_s5 + $0x1e0] sm:$0xff] }
 0x1b4   :  { %3277 = vmatpush3.msra.mxu0 %v906_v38  ;;  %v3004_v38 = vld [vmem:[%s5408_s5 + $0x160] sm:$0xff] }
 0x1b5   :  { %3278 = vmatprep.subr.mxu0 %v921_v39  ;;  %v3019_v39 = vld [vmem:[%s5408_s5 + $0x1d8] sm:$0xff] }
 0x1b6   :  { %3279 = vmatpush3.msra.mxu0 %v905_v41  ;;  %v3003_v41 = vld [vmem:[%s5408_s5 + $0x158] sm:$0xff] }
 0x1b7   :  { %3280 = vmatprep.subr.mxu0 %v920_v42  ;;  %v3018_v42 = vld [vmem:[%s5408_s5 + $0x1d0] sm:$0xff] }
 0x1b8   :  { %3281 = vmatpush3.msra.mxu0 %v904_v43  ;;  %v3002_v43 = vld [vmem:[%s5408_s5 + $0x150] sm:$0xff] }
 0x1b9   :  { %3282 = vmatprep.subr.mxu0 %v919_v44  ;;  %v3017_v44 = vld [vmem:[%s5408_s5 + $0x1c8] sm:$0xff] }
 0x1ba   :  { %3283 = vmatpush3.msra.mxu0 %v903_v45  ;;  %v3001_v45 = vld [vmem:[%s5408_s5 + $0x148] sm:$0xff] }
 0x1bb   :  { %3284 = vmatprep.subr.mxu0 %v918_v46  ;;  %v3016_v46 = vld [vmem:[%s5408_s5 + $0x1c0] sm:$0xff] }
 0x1bc   :  { %3285 = vmatpush3.msra.mxu0 %v902_v47  ;;  %v3000_v47 = vld [vmem:[%s5408_s5 + $0x140] sm:$0xff] }
 0x1bd   :  { %3286 = vmatprep.subr.mxu0 %v917_v48  ;;  %v3015_v48 = vld [vmem:[%s5408_s5 + $0x1b8] sm:$0xff] }
 0x1be   :  { %3287 = vmatpush3.msra.mxu0 %v901_v49  ;;  %v2999_v49 = vld [vmem:[%s5408_s5 + $0x138] sm:$0xff] }
 0x1bf   :  { %3288 = vmatprep.subr.mxu0 %v916_v50  ;;  %v3014_v50 = vld [vmem:[%s5408_s5 + $0x1b0] sm:$0xff] }
 0x1c0   :  { %3289 = vmatpush3.msra.mxu0 %v900_v51  ;;  %v2998_v51 = vld [vmem:[%s5408_s5 + $0x130] sm:$0xff] }
 0x1c1   :  { %3290 = vmatprep.subr.mxu0 %v915_v52  ;;  %v3013_v52 = vld [vmem:[%s5408_s5 + $0x1a8] sm:$0xff] }
 0x1c2   :  { %3291 = vmatpush3.msra.mxu0 %v899_v53  ;;  %v2997_v53 = vld [vmem:[%s5408_s5 + $0x128] sm:$0xff] }
 0x25f   :  { %v598_v58 = vpop.f32.mrf.mxu1 }
 0x260   :  { %v609_v11 = vadd.f32 %v598_v58, %v415_v3  ;;  %v3010_v58 = vld [vmem:[%s5408_s5 + $0x190] sm:$0xff]  ;;  %v897_v3 = vld [vmem:[%s5408_s5] sm:$0xff] }
 0x261   :  { %v600_v59 = vpop.f32.mrf.mxu1 }
 0x262   :  { %v610_v8 = vadd.f32 %v600_v59, %v417_v0  ;;  %v2994_v59 = vld [vmem:[%s5408_s5 + $0x110] sm:$0xff]  ;;  %v914_v0 = vld [vmem:[%s5408_s5 + $0x88] sm:$0xff] }
 0x263   :  { %v604_v61 = vpop.f32.mrf.mxu1  ;;  %3292 = vmatprep.subr.mxu0 %v914_v0  ;;  %v3079_v0 = vld [vmem:[%s5408_s5 + $0x398] sm:$0xff] }
 0x264   :  { %v611_v9 = vadd.f32 %v604_v61, %v421_v1  ;;  %v2993_v61 = vld [vmem:[%s5408_s5 + $0x108] sm:$0xff] }
 0x265   :  { %v606_v4 = vpop.f32.mrf.mxu1  ;;  %v898_v1 = vld [vmem:[%s5408_s5 + $0x8] sm:$0xff] }
 0x266   :  { %v612_v13 = vadd.f32 %v606_v4, %v423_v7  ;;  %3293 = vmatpush3.msra.mxu0 %v898_v1  ;;  %v3057_v4 = vld [vmem:[%s5408_s5 + $0x2f8] sm:$0xff]  ;;  %v3027_v1 = vld [vmem:[%s5408_s5 + $0x208] sm:$0xff] }
 0x267   :  { %v786_v63 = vpop.f32.mrf.mxu0  ;;  %3294 = vmatprep.subr.mxu0 %v913_v2  ;;  %v3041_v7 = vld [vmem:[%s5408_s5 + $0x278] sm:$0xff] }
 0x268   :  { %v797_v18 = vadd.f32 %v786_v63, %v609_v11  ;;  %v2992_v63 = vld [vmem:[%s5408_s5 + $0x100] sm:$0xff]  ;;  %3295 = vmatpush3.msra.mxu0 %v897_v3  ;;  %v3055_v11 = vld [vmem:[%s5408_s5 + $0x2e8] sm:$0xff]  ;;  %v3063_v2 = vld [vmem:[%s5408_s5 + $0x318] sm:$0xff] }
 0x269   :  { %v788_v6 = vpop.f32.mrf.mxu0  ;;  %3299 = vmatprep.subr.mxu0 %v3057_v4  ;;  %v3042_v3 = vld [vmem:[%s5408_s5 + $0x280] sm:$0xff]  ;;  %v3078_v4 = vld [vmem:[%s5408_s5 + $0x390] sm:$0xff] }
 0x26a   :  { %v798_v14 = vadd.f32 %v788_v6, %v610_v8  ;;  %v812_v20 = vadd.f32 %v805_v19, %v797_v18  ;;  %v3056_v8 = vld [vmem:[%s5408_s5 + $0x2f0] sm:$0xff]  ;;  %v3053_v18 = vld [vmem:[%s5408_s5 + $0x2d8] sm:$0xff] }
 0x26b   :  { %v792_v12 = vpop.f32.mrf.mxu0 }
 0x26c   :  { %v799_v16 = vadd.f32 %v792_v12, %v611_v9  ;;  %v813_v23 = vadd.f32 %v809_v15, %v798_v14  ;;  %v4447_v28 = vmax.f32 %v812_v20, 0.0  ;;  %v3054_v14 = vld [vmem:[%s5408_s5 + $0x2e0] sm:$0xff]  ;;  %v3074_v20 = vld [vmem:[%s5408_s5 + $0x370] sm:$0xff] }
 0x26d   :  { %v794_v17 = vpop.f32.mrf.mxu0 }
 0x26e   :  { %v800_v21 = vadd.f32 %v794_v17, %v612_v13  ;;  %v814_v22 = vadd.f32 %v805_v19, %v799_v16  ;;  %v4444_v27 = vmax.f32 %v813_v23, 0.0  ;;  %v3039_v13 = vld [vmem:[%s5408_s5 + $0x268] sm:$0xff]  ;;  %v3038_v16 = vld [vmem:[%s5408_s5 + $0x260] sm:$0xff]  ;;  %v3058_v19 = vld [vmem:[%s5407_s4 + $0x18] sm:$0xff] }
 0x26f   :  { %v3091_v17 = vld [vmem:[%s5408_s5 + $0x3f8] sm:$0xff]  ;;  %v3090_v23 = vld [vmem:[%s5408_s5 + $0x3f0] sm:$0xff] }
 0x270   :  { %v815_v24 = vadd.f32 %v809_v15, %v800_v21  ;;  %v4442_v26 = vmax.f32 %v814_v22, 0.0  ;;  %v3024_v15 = vld [vmem:[%s5407_s4 + $0x10] sm:$0xff]  ;;  %v3075_v21 = vld [vmem:[%s5408_s5 + $0x378] sm:$0xff] }
 0x271   :  { %v3037_v22 = vld [vmem:[%s5408_s5 + $0x258] sm:$0xff] }
 0x272   :  { %v4440_v25 = vmax.f32 %v815_v24, 0.0  ;;  %v3052_v24 = vld [vmem:[%s5408_s5 + $0x2d0] sm:$0xff] }
 0x274   :  { %854 = vmatprep.subr.mxu1 %v4440_v25 }
 0x275   :  { %855 = vmatpush1.msra.mxu1 %v4442_v26 }
 0x276   :  { %856 = vmatprep.subr.mxu1 %v4444_v27 }
 0x277   :  { %857 = vmatpush1.msra.mxu1 %v4447_v28 }
 0x278   :  { %2989 = vmatmul.mubr.msk.f32.vlgmr.msra.gmra.mxu1 %vm822_vm2, %v821_v29  ;;  %962 = vmatprep.subr.mxu1 %v4440_v25  ;;  %v3035_v29 = vld [vmem:[%s5408_s5 + $0x248] sm:$0xff] }
 0x279   :  { %963 = vmatpush1.msra.mxu1 %v4442_v26  ;;  %998 = vmatprep.mubr.f32.mxu1 %v3957_v40 }
 0x27a   :  { %964 = vmatprep.subr.mxu1 %v4444_v27 }
 0x27b   :  { %965 = vmatpush1.msra.mxu1 %v4447_v28 }
 0x27c   :  { %2991 = vmatmul.mubr.msk.f32.vlgmr.msra.gmra.mxu1 %vm822_vm2, %v2990_v30  ;;  %3229 = vmatprep.subr.mxu1 %v3023_v31  ;;  %v3088_v30 = vld [vmem:[%s5408_s5 + $0x3e0] sm:$0xff] }
 0x27d   :  { %3230 = vmatpush3.msra.mxu1 %v3007_v32  ;;  %v3050_v31 = vld [vmem:[%s5408_s5 + $0x2c0] sm:$0xff] }
 0x27e   :  { %3231 = vmatprep.subr.mxu1 %v3022_v33  ;;  %v3072_v32 = vld [vmem:[%s5408_s5 + $0x360] sm:$0xff] }
 0x27f   :  { %3232 = vmatpush3.msra.mxu1 %v3006_v34  ;;  %v3034_v33 = vld [vmem:[%s5408_s5 + $0x240] sm:$0xff]  ;;  %v3087_v34 = vld [vmem:[%s5408_s5 + $0x3d8] sm:$0xff] }
 0x280   :  { %3233 = vmatprep.subr.mxu1 %v3021_v35  ;;  %v3049_v35 = vld [vmem:[%s5408_s5 + $0x2b8] sm:$0xff] }
 0x281   :  { %3234 = vmatpush3.msra.mxu1 %v3005_v36  ;;  %v3071_v36 = vld [vmem:[%s5408_s5 + $0x358] sm:$0xff] }
 0x282   :  { %3235 = vmatprep.subr.mxu1 %v3020_v37  ;;  %v3033_v37 = vld [vmem:[%s5408_s5 + $0x238] sm:$0xff] }
 0x283   :  { %3236 = vmatpush3.msra.mxu1 %v3004_v38  ;;  %v3086_v38 = vld [vmem:[%s5408_s5 + $0x3d0] sm:$0xff] }
 0x284   :  { %3237 = vmatprep.subr.mxu1 %v3019_v39  ;;  %v3048_v39 = vld [vmem:[%s5408_s5 + $0x2b0] sm:$0xff] }
 0x285   :  { %3238 = vmatpush3.msra.mxu1 %v3003_v41  ;;  %v3070_v41 = vld [vmem:[%s5408_s5 + $0x350] sm:$0xff] }
 0x286   :  { %3239 = vmatprep.subr.mxu1 %v3018_v42  ;;  %v3032_v42 = vld [vmem:[%s5408_s5 + $0x230] sm:$0xff] }
 0x287   :  { %3240 = vmatpush3.msra.mxu1 %v3002_v43  ;;  %v3085_v43 = vld [vmem:[%s5408_s5 + $0x3c8] sm:$0xff] }
 0x288   :  { %3241 = vmatprep.subr.mxu1 %v3017_v44  ;;  %v3069_v44 = vld [vmem:[%s5408_s5 + $0x348] sm:$0xff] }
 0x289   :  { %3242 = vmatpush3.msra.mxu1 %v3001_v45  ;;  %v3084_v45 = vld [vmem:[%s5408_s5 + $0x3c0] sm:$0xff] }
 0x28a   :  { %3243 = vmatprep.subr.mxu1 %v3016_v46  ;;  %v3068_v46 = vld [vmem:[%s5408_s5 + $0x340] sm:$0xff] }
 0x28b   :  { %3244 = vmatpush3.msra.mxu1 %v3000_v47  ;;  %v3047_v47 = vld [vmem:[%s5408_s5 + $0x2a8] sm:$0xff] }
 0x28c   :  { %3245 = vmatprep.subr.mxu1 %v3015_v48  ;;  %v3083_v48 = vld [vmem:[%s5408_s5 + $0x3b8] sm:$0xff] }
 0x28d   :  { %3246 = vmatpush3.msra.mxu1 %v2999_v49  ;;  %v3031_v49 = vld [vmem:[%s5408_s5 + $0x228] sm:$0xff] }
 0x28e   :  { %3247 = vmatprep.subr.mxu1 %v3014_v50  ;;  %v3067_v50 = vld [vmem:[%s5408_s5 + $0x338] sm:$0xff] }
 0x28f   :  { %3248 = vmatpush3.msra.mxu1 %v2998_v51  ;;  %v3046_v51 = vld [vmem:[%s5408_s5 + $0x2a0] sm:$0xff] }
 0x290   :  { %3249 = vmatprep.subr.mxu1 %v3013_v52  ;;  %v3082_v52 = vld [vmem:[%s5408_s5 + $0x3b0] sm:$0xff] }
 0x291   :  { %3250 = vmatpush3.msra.mxu1 %v2997_v53  ;;  %v3030_v53 = vld [vmem:[%s5408_s5 + $0x220] sm:$0xff] }
 0x292   :  { %3251 = vmatprep.subr.mxu1 %v3012_v54  ;;  %v3066_v54 = vld [vmem:[%s5408_s5 + $0x330] sm:$0xff] }
 0x293   :  { %3252 = vmatpush3.msra.mxu1 %v2996_v55  ;;  %v3045_v55 = vld [vmem:[%s5408_s5 + $0x298] sm:$0xff] }
 0x294   :  { %3253 = vmatprep.subr.mxu1 %v3011_v56  ;;  %v3081_v56 = vld [vmem:[%s5408_s5 + $0x3a8] sm:$0xff] }
 0x295   :  { %3254 = vmatpush3.msra.mxu1 %v2995_v57  ;;  %v3029_v57 = vld [vmem:[%s5408_s5 + $0x218] sm:$0xff] }
 0x296   :  { %3255 = vmatprep.subr.mxu1 %v3010_v58  ;;  %v3065_v58 = vld [vmem:[%s5408_s5 + $0x328] sm:$0xff] }
 0x297   :  { %3256 = vmatpush3.msra.mxu1 %v2994_v59  ;;  %v3044_v59 = vld [vmem:[%s5408_s5 + $0x290] sm:$0xff] }
 0x298   :  { %3257 = vmatprep.subr.mxu1 %v3009_v60  ;;  %v3080_v60 = vld [vmem:[%s5408_s5 + $0x3a0] sm:$0xff] }
 0x299   :  { %3258 = vmatpush3.msra.mxu1 %v2993_v61  ;;  %v3028_v61 = vld [vmem:[%s5408_s5 + $0x210] sm:$0xff] }
 0x29a   :  { %3259 = vmatprep.subr.mxu1 %v3008_v62  ;;  %v3064_v62 = vld [vmem:[%s5408_s5 + $0x320] sm:$0xff] }
 0x29b   :  { %3260 = vmatpush3.msra.mxu1 %v2992_v63  ;;  %v3043_v63 = vld [vmem:[%s5408_s5 + $0x288] sm:$0xff] }
 0x29c   :  { %1211 = vmatprep.subr.mxu1 %v4440_v25 }
 0x338   :  { %v892_v5 = vpop.f32.mrf.mxu1 }
 0x33a   :  { %v894_v6 = vpop.f32.mrf.mxu1 }
 0x33b   :  { %1172 = vmatprep.mubr.f32.mxu0 %v894_v6  ;;  %v3062_v6 = vld [vmem:[%s5408_s5 + $0x310] sm:$0xff] }
 0x33c   :  { %v1000_v9 = vpop.f32.mrf.mxu1  ;;  %1173 = vmatmul.mubr.f32.vlgmr.msra.gmra.mxu0 %v892_v5  ;;  %v3026_v5 = vld [vmem:[%s5408_s5 + $0x200] sm:$0xff] }
 0x33d   :  { %3300 = vmatpush3.msra.mxu0 %v3041_v7  ;;  %v3077_v7 = vld [vmem:[%s5408_s5 + $0x388] sm:$0xff] }
 0x33e   :  { %v1002_v12 = vpop.f32.mrf.mxu1  ;;  %3301 = vmatprep.subr.mxu0 %v3056_v8  ;;  %v3061_v8 = vld [vmem:[%s5408_s5 + $0x308] sm:$0xff] }
 0x33f   :  { %1102 = vmatprep.mubr.f32.mxu1 %v1002_v12  ;;  %3302 = vmatpush3.msra.mxu0 %v3040_v10  ;;  %v3060_v10 = vld [vmem:[%s5408_s5 + $0x300] sm:$0xff] }
 0x340   :  { %1103 = vmatmul.mubr.f32.vlgmr.msra.gmra.mxu1 %v1000_v9  ;;  %3303 = vmatprep.subr.mxu0 %v3055_v11  ;;  %v3076_v9 = vld [vmem:[%s5408_s5 + $0x380] sm:$0xff] }
 0x341   :  { %1212 = vmatpush1.msra.mxu1 %v4442_v26  ;;  %1247 = vmatprep.mubr.f32.mxu1 %v3957_v40 }
 0x342   :  { %1213 = vmatprep.subr.mxu1 %v4444_v27  ;;  %3304 = vmatpush3.msra.mxu0 %v3039_v13 }
 0x343   :  { %1214 = vmatpush1.msra.mxu1 %v4447_v28  ;;  %3305 = vmatprep.subr.mxu0 %v3054_v14 }
 0x344   :  { %1391 = vmatprep.subr.mxu1 %v4440_v25  ;;  %3025 = vmatmul.mubr.msk.f32.vlgmr.msra.gmra.mxu1 %vm822_vm2, %v3024_v15  ;;  %v3036_v25 = vld [vmem:[%s5408_s5 + $0x250] sm:$0xff] }
 0x345   :  { %1392 = vmatpush1.msra.mxu1 %v4442_v26  ;;  %1427 = vmatprep.mubr.f32.mxu1 %v3957_v40  ;;  %v3089_v26 = vld [vmem:[%s5408_s5 + $0x3e8] sm:$0xff] }
 0x346   :  { %1393 = vmatprep.subr.mxu1 %v4444_v27  ;;  %3306 = vmatpush3.msra.mxu0 %v3038_v16  ;;  %v3051_v27 = vld [vmem:[%s5408_s5 + $0x2c8] sm:$0xff] }
 0x347   :  { %1394 = vmatpush1.msra.mxu1 %v4447_v28  ;;  %3307 = vmatprep.subr.mxu0 %v3053_v18  ;;  %v3073_v28 = vld [vmem:[%s5408_s5 + $0x368] sm:$0xff] }
 0x348   :  { %3059 = vmatmul.mubr.msk.f32.vlgmr.msra.gmra.mxu1 %vm822_vm2, %v3058_v19  ;;  %3334 = vmatprep.subr.mxu1 %v3091_v17  ;;  %v3111_v19 = vld [vmem:[%s5411_s8 + $0xf8] sm:$0xff]  ;;  %v3110_v17 = vld [vmem:[%s5411_s8 + $0xf0] sm:$0xff] }
 0x349   :  { %3335 = vmatpush3.msra.mxu1 %v3075_v21  ;;  %3308 = vmatpush3.msra.mxu0 %v3037_v22  ;;  %v3109_v21 = vld [vmem:[%s5411_s8 + $0xe8] sm:$0xff]  ;;  %v3108_v22 = vld [vmem:[%s5411_s8 + $0xe0] sm:$0xff] }
 0x34a   :  { %3336 = vmatprep.subr.mxu1 %v3090_v23  ;;  %3309 = vmatprep.subr.mxu0 %v3052_v24  ;;  %v3107_v23 = vld [vmem:[%s5411_s8 + $0xd8] sm:$0xff]  ;;  %v3106_v24 = vld [vmem:[%s5411_s8 + $0xd0] sm:$0xff] }
 0x34b   :  { %3337 = vmatpush3.msra.mxu1 %v3074_v20  ;;  %3310 = vmatpush3.msra.mxu0 %v3036_v25  ;;  %v3105_v20 = vld [vmem:[%s5411_s8 + $0xc8] sm:$0xff]  ;;  %v3104_v25 = vld [vmem:[%s5411_s8 + $0xc0] sm:$0xff] }
 0x34c   :  { %3338 = vmatprep.subr.mxu1 %v3089_v26  ;;  %3311 = vmatprep.subr.mxu0 %v3051_v27  ;;  %v3103_v26 = vld [vmem:[%s5411_s8 + $0xb8] sm:$0xff]  ;;  %v3102_v27 = vld [vmem:[%s5411_s8 + $0xb0] sm:$0xff] }
 0x34d   :  { %3339 = vmatpush3.msra.mxu1 %v3073_v28  ;;  %3312 = vmatpush3.msra.mxu0 %v3035_v29  ;;  %v3101_v28 = vld [vmem:[%s5411_s8 + $0xa8] sm:$0xff]  ;;  %v3100_v29 = vld [vmem:[%s5411_s8 + $0xa0] sm:$0xff] }
 0x34e   :  { %3340 = vmatprep.subr.mxu1 %v3088_v30  ;;  %3313 = vmatprep.subr.mxu0 %v3050_v31  ;;  %v3099_v30 = vld [vmem:[%s5411_s8 + $0x98] sm:$0xff]  ;;  %v3098_v31 = vld [vmem:[%s5411_s8 + $0x90] sm:$0xff] }
 0x34f   :  { %3341 = vmatpush3.msra.mxu1 %v3072_v32  ;;  %3314 = vmatpush3.msra.mxu0 %v3034_v33 }
 0x350   :  { %3342 = vmatprep.subr.mxu1 %v3087_v34  ;;  %3315 = vmatprep.subr.mxu0 %v3049_v35 }
 0x351   :  { %3343 = vmatpush3.msra.mxu1 %v3071_v36  ;;  %3316 = vmatpush3.msra.mxu0 %v3033_v37 }
 0x352   :  { %3344 = vmatprep.subr.mxu1 %v3086_v38  ;;  %3317 = vmatprep.subr.mxu0 %v3048_v39 }
 0x353   :  { %3345 = vmatpush3.msra.mxu1 %v3070_v41  ;;  %3318 = vmatpush3.msra.mxu0 %v3032_v42 }
 0x354   :  { %3346 = vmatprep.subr.mxu1 %v3085_v43  ;;  %3319 = vmatprep.subr.mxu0 %v3047_v47 }
 0x355   :  { %3347 = vmatpush3.msra.mxu1 %v3069_v44  ;;  %3320 = vmatpush3.msra.mxu0 %v3031_v49  ;;  %v3092_v44 = vld [vmem:[%s5409_s6] ss:$0 sm:$0xff]  ;;  %v3094_v49 = vld [vmem:[%s5410_s7 + $0x8] sm:$0xff] }
 0x356   :  { %3348 = vmatprep.subr.mxu1 %v3084_v45  ;;  %3321 = vmatprep.subr.mxu0 %v3046_v51  ;;  %v1636_v51 = vld [vmem:[%s5411_s8 + $0x70] sm:$0xff] }
 0x357   :  { %3349 = vmatpush3.msra.mxu1 %v3068_v46  ;;  %3322 = vmatpush3.msra.mxu0 %v3030_v53  ;;  %v1634_v53 = vld [vmem:[%s5411_s8 + $0x60] sm:$0xff] }
 0x358   :  { %3350 = vmatprep.subr.mxu1 %v3083_v48  ;;  %3323 = vmatprep.subr.mxu0 %v3045_v55  ;;  %v1547_v48 = vld [vmem:[%s5410_s7] sm:$0xff]  ;;  %v1632_v55 = vld [vmem:[%s5411_s8 + $0x50] sm:$0xff] }
 0x359   :  { %3351 = vmatpush3.msra.mxu1 %v3067_v50  ;;  %3324 = vmatpush3.msra.mxu0 %v3029_v57  ;;  %v1637_v50 = vld [vmem:[%s5411_s8 + $0x78] sm:$0xff]  ;;  %v1630_v57 = vld [vmem:[%s5411_s8 + $0x40] sm:$0xff] }
 0x35a   :  { %3352 = vmatprep.subr.mxu1 %v3082_v52  ;;  %3325 = vmatprep.subr.mxu0 %v3044_v59  ;;  %v1635_v52 = vld [vmem:[%s5411_s8 + $0x68] sm:$0xff]  ;;  %v1628_v59 = vld [vmem:[%s5411_s8 + $0x30] sm:$0xff] }
 0x35b   :  { %3353 = vmatpush3.msra.mxu1 %v3066_v54  ;;  %3326 = vmatpush3.msra.mxu0 %v3028_v61  ;;  %v1633_v54 = vld [vmem:[%s5411_s8 + $0x58] sm:$0xff]  ;;  %v1626_v61 = vld [vmem:[%s5411_s8 + $0x20] sm:$0xff] }
 0x35c   :  { %3354 = vmatprep.subr.mxu1 %v3081_v56  ;;  %3327 = vmatprep.subr.mxu0 %v3043_v63  ;;  %v1631_v56 = vld [vmem:[%s5411_s8 + $0x48] sm:$0xff]  ;;  %v1624_v63 = vld [vmem:[%s5411_s8 + $0x10] sm:$0xff] }
 0x35d   :  { %3355 = vmatpush3.msra.mxu1 %v3065_v58  ;;  %3328 = vmatpush3.msra.mxu0 %v3027_v1  ;;  %v1629_v58 = vld [vmem:[%s5411_s8 + $0x38] sm:$0xff]  ;;  %v1622_v1 = vld [vmem:[%s5411_s8] sm:$0xff] }
 0x35e   :  { %3356 = vmatprep.subr.mxu1 %v3080_v60  ;;  %3329 = vmatprep.subr.mxu0 %v3042_v3  ;;  %v1627_v60 = vld [vmem:[%s5411_s8 + $0x28] sm:$0xff]  ;;  %v3096_v3 = vld [vmem:[%s5411_s8 + $0x80] sm:$0xff] }
 0x35f   :  { %3357 = vmatpush3.msra.mxu1 %v3064_v62  ;;  %3330 = vmatpush3.msra.mxu0 %v3026_v5  ;;  %v1625_v62 = vld [vmem:[%s5411_s8 + $0x18] sm:$0xff] }
 0x360   :  { %3358 = vmatprep.subr.mxu1 %v3079_v0  ;;  %3565 = vmatprep.subr.mxu0 %v3957_v40  ;;  %v1623_v0 = vld [vmem:[%s5411_s8 + $0x8] sm:$0xff] }
 0x361   :  { %3359 = vmatpush3.msra.mxu1 %v3063_v2  ;;  %v3097_v2 = vld [vmem:[%s5411_s8 + $0x88] sm:$0xff] }
 0x362   :  { %3360 = vmatprep.subr.mxu1 %v3078_v4  ;;  %v3129_v4 = vld [vmem:[%s5411_s8 + $0x178] sm:$0xff] }
 0x363   :  { %3361 = vmatpush3.msra.mxu1 %v3062_v6  ;;  %v3128_v6 = vld [vmem:[%s5411_s8 + $0x170] sm:$0xff] }
 0x364   :  { %3362 = vmatprep.subr.mxu1 %v3077_v7 }
 0x365   :  { %3363 = vmatpush3.msra.mxu1 %v3061_v8 }
 0x366   :  { %3364 = vmatprep.subr.mxu1 %v3076_v9  ;;  %v3127_v9 = vld [vmem:[%s5411_s8 + $0x168] sm:$0xff] }
 0x367   :  { %3365 = vmatpush3.msra.mxu1 %v3060_v10 }
 0x368   :  { %3575 = vmatprep.subr.mxu1 %v3957_v40 }
 0x3fc   :  { %v3296_v32 = vpop.f32.mrf.mxu0 }
 0x3fe   :  { %v3297_v33 = vpop.f32.mrf.mxu0 }
 0x3ff   :  { %v3298_v36 = vadd.f32 %v3297_v33, %v3296_v32  ;;  %v3117_v32 = vld [vmem:[%s5411_s8 + $0x118] sm:$0xff]  ;;  %v3137_v33 = vld [vmem:[%s5411_s8 + $0x1a8] sm:$0xff] }
 0x400   :  { %v3261_v11 = vpop.f32.mrf.mxu1 }
 0x402   :  { %v3262_v12 = vpop.f32.mrf.mxu1 }
 0x403   :  { %v3263_v13 = vadd.f32 %v3262_v12, %v3261_v11  ;;  %v3112_v11 = vld [vmem:[%s5410_s7 + $0x10] sm:$0xff]  ;;  %v3126_v12 = vld [vmem:[%s5411_s8 + $0x160] sm:$0xff] }
 0x404   :  { %v1249_v14 = vpop.f32.mrf.mxu1 }
 0x405   :  { %v1175_v39 = vadd.f32 %v3298_v36, %v3263_v13  ;;  %v3125_v13 = vld [vmem:[%s5411_s8 + $0x158] sm:$0xff]  ;;  %v3115_v36 = vld [vmem:[%s5411_s8 + $0x108] sm:$0xff] }
 0x406   :  { %v1251_v15 = vpop.f32.mrf.mxu1 }
 0x407   :  { %1351 = vmatprep.mubr.f32.mxu0 %v1251_v15  ;;  %v3147_v15 = vld [vmem:[%s5411_s8 + $0x1f8] sm:$0xff] }
 0x408   :  { %1352 = vmatmul.mubr.f32.vlgmr.msra.gmra.mxu0 %v1249_v14  ;;  %v1429_v16 = vpop.f32.mrf.mxu1  ;;  %v3130_v14 = vld [vmem:[%s5410_s7 + $0x18] sm:$0xff] }
 0x409   :  { %3567 = vmatprep.mubr.msk.f32.mxu0 %vm3958_vm3, %v3957_v40 }
 0x40a   :  { %v1431_v18 = vpop.f32.mrf.mxu1 }
 0x40b   :  { %1531 = vmatprep.mubr.f32.mxu1 %v1431_v18  ;;  %v3146_v18 = vld [vmem:[%s5411_s8 + $0x1f0] sm:$0xff] }
 0x40c   :  { %1532 = vmatmul.mubr.f32.vlgmr.msra.gmra.mxu1 %v1429_v16  ;;  %v3124_v16 = vld [vmem:[%s5411_s8 + $0x150] sm:$0xff] }
 0x40d   :  { %3607 = vmatprep.mubr.msk.f32.mxu1 %vm3958_vm3, %v3957_v40  ;;  %3576 = vmatpush3.msra.mxu1 %v3111_v19  ;;  %v3123_v19 = vld [vmem:[%s5411_s8 + $0x148] sm:$0xff] }
 0x40e   :  { %3577 = vmatprep.subr.mxu1 %v3957_v40 }
 0x40f   :  { %3578 = vmatpush3.msra.mxu1 %v3110_v17  ;;  %v3145_v17 = vld [vmem:[%s5411_s8 + $0x1e8] sm:$0xff] }
 0x410   :  { %3579 = vmatprep.subr.mxu1 %v3957_v40 }
 0x411   :  { %3580 = vmatpush3.msra.mxu1 %v3109_v21  ;;  %v3122_v21 = vld [vmem:[%s5411_s8 + $0x140] sm:$0xff] }
 0x412   :  { %3581 = vmatprep.subr.mxu1 %v3957_v40 }
 0x413   :  { %3582 = vmatpush3.msra.mxu1 %v3108_v22  ;;  %v3144_v22 = vld [vmem:[%s5411_s8 + $0x1e0] sm:$0xff] }
 0x414   :  { %3583 = vmatprep.subr.mxu1 %v3957_v40 }
 0x415   :  { %3584 = vmatpush3.msra.mxu1 %v3107_v23  ;;  %v3121_v23 = vld [vmem:[%s5411_s8 + $0x138] sm:$0xff] }
 0x416   :  { %3585 = vmatprep.subr.mxu1 %v3957_v40 }
 0x417   :  { %3586 = vmatpush3.msra.mxu1 %v3106_v24  ;;  %v3143_v24 = vld [vmem:[%s5411_s8 + $0x1d8] sm:$0xff] }
 0x418   :  { %3587 = vmatprep.subr.mxu1 %v3957_v40 }
 0x419   :  { %3588 = vmatpush3.msra.mxu1 %v3105_v20  ;;  %v3120_v20 = vld [vmem:[%s5411_s8 + $0x130] sm:$0xff] }
 0x41a   :  { %3589 = vmatprep.subr.mxu1 %v3957_v40 }
 0x41b   :  { %3590 = vmatpush3.msra.mxu1 %v3104_v25  ;;  %v3142_v25 = vld [vmem:[%s5411_s8 + $0x1d0] sm:$0xff] }
 0x41c   :  { %3591 = vmatprep.subr.mxu1 %v3957_v40 }
 0x41d   :  { %3592 = vmatpush3.msra.mxu1 %v3103_v26  ;;  %v3119_v26 = vld [vmem:[%s5411_s8 + $0x128] sm:$0xff] }
 0x41e   :  { %3593 = vmatprep.subr.mxu1 %v3957_v40 }
 0x41f   :  { %3594 = vmatpush3.msra.mxu1 %v3102_v27  ;;  %v3141_v27 = vld [vmem:[%s5411_s8 + $0x1c8] sm:$0xff] }
 0x420   :  { %3595 = vmatprep.subr.mxu1 %v3957_v40 }
 0x421   :  { %3596 = vmatpush3.msra.mxu1 %v3101_v28  ;;  %v3140_v28 = vld [vmem:[%s5411_s8 + $0x1c0] sm:$0xff] }
 0x422   :  { %3597 = vmatprep.subr.mxu1 %v3957_v40 }
 0x423   :  { %3598 = vmatpush3.msra.mxu1 %v3100_v29  ;;  %v3139_v29 = vld [vmem:[%s5411_s8 + $0x1b8] sm:$0xff] }
 0x424   :  { %3599 = vmatprep.subr.mxu1 %v3957_v40 }
 0x425   :  { %3600 = vmatpush3.msra.mxu1 %v3099_v30  ;;  %v3118_v30 = vld [vmem:[%s5411_s8 + $0x120] sm:$0xff] }
 0x426   :  { %3601 = vmatprep.subr.mxu1 %v3957_v40 }
 0x427   :  { %3602 = vmatpush3.msra.mxu1 %v3098_v31  ;;  %v3138_v31 = vld [vmem:[%s5411_s8 + $0x1b0] sm:$0xff] }
 0x428   :  { %3603 = vmatprep.subr.mxu1 %v3957_v40 }
 0x429   :  { %3604 = vmatpush3.msra.mxu1 %v3097_v2 }
 0x42a   :  { %3605 = vmatprep.subr.mxu1 %v3957_v40 }
 0x42b   :  { %3606 = vmatpush3.msra.mxu1 %v3096_v3 }
 0x42c   :  { %3645 = vmatprep.subr.mxu1 %v3957_v40 }
 0x4c8   :  { %v3331_v34 = vpop.f32.mrf.mxu0 }
 0x4ca   :  { %v3332_v35 = vpop.f32.mrf.mxu0 }
 0x4cb   :  { %v3333_v37 = vadd.f32 %v3332_v35, %v3331_v34  ;;  %v3116_v34 = vld [vmem:[%s5411_s8 + $0x110] sm:$0xff]  ;;  %v3136_v35 = vld [vmem:[%s5411_s8 + $0x1a0] sm:$0xff] }
 0x4cc   :  { %v3366_v38 = vpop.f32.mrf.mxu1 }
 0x4cd   :  { %v1357_v42 = vadd.f32 %v3333_v37, %v1175_v39  ;;  %v3135_v37 = vld [vmem:[%s5411_s8 + $0x198] sm:$0xff]  ;;  %v3134_v39 = vld [vmem:[%s5411_s8 + $0x190] sm:$0xff] }
 0x4ce   :  { %v3367_v41 = vpop.f32.mrf.mxu1 }
 0x4cf   :  { %v3368_v43 = vadd.f32 %v3367_v41, %v3366_v38  ;;  %v3114_v38 = vld [vmem:[%s5411_s8 + $0x100] sm:$0xff]  ;;  %v3133_v41 = vld [vmem:[%s5411_s8 + $0x188] sm:$0xff] }
 0x4d1   :  { %v1537_v45 = vadd.f32 %v3368_v43, %v1357_v42  ;;  %v3132_v42 = vld [vmem:[%s5411_s8 + $0x180] sm:$0xff] }
 0x4d3   :  { %v1544_v46 = vadd.f32 %v3092_v44, %v1537_v45 }
 0x4d5   :  { %v4848_v47 = vmax.f32 %v1544_v46, 0.0 }
 0x4d7   :  { %3566 = vmatpush3.msra.mxu0 %v4848_v47 }
 0x4d8   :  { %3568 = vmatmul.mubr.msk.f32.vlgmr.msra.gmra.mxu0 %vm1548_vm4, %v1547_v48  ;;  %3570 = vmatprep.subr.mxu0 %v3957_v40 }
 0x4d9   :  { %3571 = vmatpush3.msra.mxu0 %v4848_v47  ;;  %3572 = vmatprep.mubr.msk.f32.mxu0 %vm3958_vm3, %v3957_v40 }
 0x4da   :  { %3610 = vmatprep.subr.mxu0 %v3957_v40 }
 0x4dc   :  { %3573 = vmatmul.mubr.msk.f32.vlgmr.msra.gmra.mxu0 %vm1548_vm4, %v3094_v49 }
 0x4dd   :  { %3611 = vmatpush3.msra.mxu0 %v1637_v50  ;;  %3642 = vmatprep.mubr.msk.f32.mxu0 %vm3958_vm3, %v3957_v40 }
 0x4de   :  { %3612 = vmatprep.subr.mxu0 %v3957_v40 }
 0x4df   :  { %3613 = vmatpush3.msra.mxu0 %v1636_v51 }
 0x4e0   :  { %3614 = vmatprep.subr.mxu0 %v3957_v40 }
 0x4e1   :  { %3615 = vmatpush3.msra.mxu0 %v1635_v52  ;;  %v3167_v52 = vld [vmem:[%s5414_s11 + $0xf8] sm:$0xff] }
 0x4e2   :  { %3616 = vmatprep.subr.mxu0 %v3957_v40 }
 0x4e3   :  { %3617 = vmatpush3.msra.mxu0 %v1634_v53  ;;  %v3166_v53 = vld [vmem:[%s5414_s11 + $0xf0] sm:$0xff] }
 0x4e4   :  { %3618 = vmatprep.subr.mxu0 %v3957_v40 }
 0x4e5   :  { %3619 = vmatpush3.msra.mxu0 %v1633_v54  ;;  %v3165_v54 = vld [vmem:[%s5414_s11 + $0xe8] sm:$0xff] }
 0x4e6   :  { %3620 = vmatprep.subr.mxu0 %v3957_v40 }
 0x4e7   :  { %3621 = vmatpush3.msra.mxu0 %v1632_v55  ;;  %v3164_v55 = vld [vmem:[%s5414_s11 + $0xe0] sm:$0xff] }
 0x4e8   :  { %3622 = vmatprep.subr.mxu0 %v3957_v40 }
 0x4e9   :  { %3623 = vmatpush3.msra.mxu0 %v1631_v56  ;;  %v3163_v56 = vld [vmem:[%s5414_s11 + $0xd8] sm:$0xff] }
 0x4ea   :  { %3624 = vmatprep.subr.mxu0 %v3957_v40 }
 0x4eb   :  { %3625 = vmatpush3.msra.mxu0 %v1630_v57  ;;  %v3162_v57 = vld [vmem:[%s5414_s11 + $0xd0] sm:$0xff] }
 0x4ec   :  { %3626 = vmatprep.subr.mxu0 %v3957_v40 }
 0x4ed   :  { %3627 = vmatpush3.msra.mxu0 %v1629_v58  ;;  %v3161_v58 = vld [vmem:[%s5414_s11 + $0xc8] sm:$0xff] }
 0x4ee   :  { %3628 = vmatprep.subr.mxu0 %v3957_v40 }
 0x4ef   :  { %3629 = vmatpush3.msra.mxu0 %v1628_v59  ;;  %v3160_v59 = vld [vmem:[%s5414_s11 + $0xc0] sm:$0xff] }
 0x4f0   :  { %3630 = vmatprep.subr.mxu0 %v3957_v40 }
 0x4f1   :  { %3631 = vmatpush3.msra.mxu0 %v1627_v60  ;;  %v3159_v60 = vld [vmem:[%s5414_s11 + $0xb8] sm:$0xff] }
 0x4f2   :  { %3632 = vmatprep.subr.mxu0 %v3957_v40 }
 0x4f3   :  { %3633 = vmatpush3.msra.mxu0 %v1626_v61  ;;  %v3158_v61 = vld [vmem:[%s5414_s11 + $0xb0] sm:$0xff] }
 0x4f4   :  { %3634 = vmatprep.subr.mxu0 %v3957_v40 }
 0x4f5   :  { %3635 = vmatpush3.msra.mxu0 %v1625_v62  ;;  %v3157_v62 = vld [vmem:[%s5414_s11 + $0xa8] sm:$0xff] }
 0x4f6   :  { %3636 = vmatprep.subr.mxu0 %v3957_v40 }
 0x4f7   :  { %3637 = vmatpush3.msra.mxu0 %v1624_v63  ;;  %v3156_v63 = vld [vmem:[%s5414_s11 + $0xa0] sm:$0xff] }
 0x4f8   :  { %3638 = vmatprep.subr.mxu0 %v3957_v40 }
 0x4f9   :  { %3639 = vmatpush3.msra.mxu0 %v1623_v0  ;;  %v3155_v0 = vld [vmem:[%s5414_s11 + $0x98] sm:$0xff] }
 0x4fa   :  { %3640 = vmatprep.subr.mxu0 %v3957_v40 }
 0x4fb   :  { %3641 = vmatpush3.msra.mxu0 %v1622_v1  ;;  %v3154_v1 = vld [vmem:[%s5414_s11 + $0x90] sm:$0xff] }
 0x4fc   :  { %3650 = vmatprep.subr.mxu0 %v3957_v40 }
 0x598   :  { %v1618_v5 = vpop.f32.mrf.mxu0 }
 0x599   :  { %3643 = vmatmul.mubr.f32.vlgmr.msra.gmra.mxu0 %v1618_v5  ;;  %v3148_v5 = vld [vmem:[%s5412_s9] ss:$0 sm:$0xff] }
 0x59a   :  { %v3569_v7 = vpop.f32.mrf.mxu0  ;;  %3651 = vmatpush3.msra.mxu0 %v3129_v4  ;;  %3682 = vmatprep.mubr.msk.f32.mxu0 %vm3958_vm3, %v3957_v40 }
 0x59b   :  { %3652 = vmatprep.subr.mxu0 %v3957_v40 }
 0x59c   :  { %v1709_v8 = vpop.f32.mrf.mxu0  ;;  %3653 = vmatpush3.msra.mxu0 %v3128_v6 }
 0x59d   :  { %3608 = vmatmul.mubr.f32.vlgmr.msra.gmra.mxu1 %v1709_v8  ;;  %3654 = vmatprep.subr.mxu0 %v3957_v40 }
 0x59e   :  { %3646 = vmatpush3.msra.mxu1 %v4848_v47  ;;  %v3574_v10 = vpop.f32.mrf.mxu0  ;;  %3647 = vmatprep.mubr.msk.f32.mxu1 %vm3958_vm3, %v3957_v40 }
 0x59f   :  { %3685 = vmatprep.subr.mxu1 %v3957_v40  ;;  %3655 = vmatpush3.msra.mxu0 %v3127_v9 }
 0x5a0   :  { %3656 = vmatprep.subr.mxu0 %v3957_v40 }
 0x5a1   :  { %3648 = vmatmul.mubr.msk.f32.vlgmr.msra.gmra.mxu1 %vm1548_vm4, %v3112_v11  ;;  %3657 = vmatpush3.msra.mxu0 %v3126_v12  ;;  %v2205_v11 = vld [vmem:[%s5413_s10] sm:$0x3]  ;;  %v3150_v12 = vld [vmem:[%s5413_s10 + $0x2] sm:$0x3] }
 0x5a2   :  { %3686 = vmatpush3.msra.mxu1 %v4848_v47  ;;  %3687 = vmatprep.mubr.msk.f32.mxu1 %vm3958_vm3, %v3957_v40 }
 0x5a3   :  { %3690 = vmatprep.subr.mxu1 %v3957_v40  ;;  %3658 = vmatprep.subr.mxu0 %v3957_v40 }
 0x5a4   :  { %3659 = vmatpush3.msra.mxu0 %v3125_v13  ;;  %v2294_v13 = vld [vmem:[%s5414_s11 + $0x78] sm:$0xff] }
 0x5a5   :  { %3688 = vmatmul.mubr.msk.f32.vlgmr.msra.gmra.mxu1 %vm1548_vm4, %v3130_v14  ;;  %3660 = vmatprep.subr.mxu0 %v3957_v40  ;;  %v2293_v14 = vld [vmem:[%s5414_s11 + $0x70] sm:$0xff] }
 0x5a6   :  { %3691 = vmatpush3.msra.mxu1 %v3147_v15  ;;  %3661 = vmatpush3.msra.mxu0 %v3124_v16  ;;  %v2292_v15 = vld [vmem:[%s5414_s11 + $0x68] sm:$0xff]  ;;  %v2291_v16 = vld [vmem:[%s5414_s11 + $0x60] sm:$0xff] }
 0x5a7   :  { %3692 = vmatprep.subr.mxu1 %v3957_v40  ;;  %3662 = vmatprep.subr.mxu0 %v3957_v40 }
 0x5a8   :  { %3693 = vmatpush3.msra.mxu1 %v3146_v18  ;;  %3663 = vmatpush3.msra.mxu0 %v3123_v19  ;;  %v2290_v18 = vld [vmem:[%s5414_s11 + $0x58] sm:$0xff]  ;;  %v2289_v19 = vld [vmem:[%s5414_s11 + $0x50] sm:$0xff] }
 0x5a9   :  { %3694 = vmatprep.subr.mxu1 %v3957_v40  ;;  %3664 = vmatprep.subr.mxu0 %v3957_v40 }
 0x5aa   :  { %3695 = vmatpush3.msra.mxu1 %v3145_v17  ;;  %3665 = vmatpush3.msra.mxu0 %v3122_v21  ;;  %v2288_v17 = vld [vmem:[%s5414_s11 + $0x48] sm:$0xff]  ;;  %v2287_v21 = vld [vmem:[%s5414_s11 + $0x40] sm:$0xff] }
 0x5ab   :  { %3696 = vmatprep.subr.mxu1 %v3957_v40  ;;  %3666 = vmatprep.subr.mxu0 %v3957_v40 }
 0x5ac   :  { %3697 = vmatpush3.msra.mxu1 %v3144_v22  ;;  %3667 = vmatpush3.msra.mxu0 %v3121_v23  ;;  %v2286_v22 = vld [vmem:[%s5414_s11 + $0x38] sm:$0xff]  ;;  %v2285_v23 = vld [vmem:[%s5414_s11 + $0x30] sm:$0xff] }
 0x5ad   :  { %3698 = vmatprep.subr.mxu1 %v3957_v40  ;;  %3668 = vmatprep.subr.mxu0 %v3957_v40 }
 0x5ae   :  { %3699 = vmatpush3.msra.mxu1 %v3143_v24  ;;  %3669 = vmatpush3.msra.mxu0 %v3120_v20  ;;  %v2284_v24 = vld [vmem:[%s5414_s11 + $0x28] sm:$0xff]  ;;  %v2283_v20 = vld [vmem:[%s5414_s11 + $0x20] sm:$0xff] }
 0x5af   :  { %3700 = vmatprep.subr.mxu1 %v3957_v40  ;;  %3670 = vmatprep.subr.mxu0 %v3957_v40 }
 0x5b0   :  { %3701 = vmatpush3.msra.mxu1 %v3142_v25  ;;  %3671 = vmatpush3.msra.mxu0 %v3119_v26  ;;  %v2282_v25 = vld [vmem:[%s5414_s11 + $0x18] sm:$0xff]  ;;  %v2281_v26 = vld [vmem:[%s5414_s11 + $0x10] sm:$0xff] }
 0x5b1   :  { %3702 = vmatprep.subr.mxu1 %v3957_v40  ;;  %3672 = vmatprep.subr.mxu0 %v3957_v40 }
 0x5b2   :  { %3703 = vmatpush3.msra.mxu1 %v3141_v27  ;;  %3722 = vmatprep.mubr.msk.f32.mxu1 %vm3958_vm3, %v3957_v40  ;;  %v2280_v27 = vld [vmem:[%s5414_s11 + $0x8] sm:$0xff] }
 0x5b3   :  { %3704 = vmatprep.subr.mxu1 %v3957_v40  ;;  %3673 = vmatpush3.msra.mxu0 %v3118_v30  ;;  %v3152_v30 = vld [vmem:[%s5414_s11 + $0x80] sm:$0xff] }
 0x5b4   :  { %3705 = vmatpush3.msra.mxu1 %v3140_v28  ;;  %3674 = vmatprep.subr.mxu0 %v3957_v40  ;;  %v3153_v28 = vld [vmem:[%s5414_s11 + $0x88] sm:$0xff] }
 0x5b5   :  { %3706 = vmatprep.subr.mxu1 %v3957_v40  ;;  %3675 = vmatpush3.msra.mxu0 %v3117_v32 }
 0x5b6   :  { %3707 = vmatpush3.msra.mxu1 %v3139_v29  ;;  %3676 = vmatprep.subr.mxu0 %v3957_v40  ;;  %v2279_v29 = vld [vmem:[%s5414_s11] sm:$0xff] }
 0x5b7   :  { %3708 = vmatprep.subr.mxu1 %v3957_v40  ;;  %3677 = vmatpush3.msra.mxu0 %v3116_v34 }
 0x5b8   :  { %3709 = vmatpush3.msra.mxu1 %v3138_v31  ;;  %3678 = vmatprep.subr.mxu0 %v3957_v40  ;;  %v3185_v31 = vld [vmem:[%s5414_s11 + $0x178] sm:$0xff] }
 0x5b9   :  { %3710 = vmatprep.subr.mxu1 %v3957_v40  ;;  %3679 = vmatpush3.msra.mxu0 %v3115_v36  ;;  %v3183_v36 = vld [vmem:[%s5414_s11 + $0x168] sm:$0xff] }
 0x5ba   :  { %3711 = vmatpush3.msra.mxu1 %v3137_v33  ;;  %3680 = vmatprep.subr.mxu0 %v3957_v40  ;;  %v3184_v33 = vld [vmem:[%s5414_s11 + $0x170] sm:$0xff] }
 0x5bb   :  { %3712 = vmatprep.subr.mxu1 %v3957_v40  ;;  %3681 = vmatpush3.msra.mxu0 %v3114_v38  ;;  %v3168_v38 = vld [vmem:[%s5413_s10 + $0x4] sm:$0x3] }
 0x5bc   :  { %3713 = vmatpush3.msra.mxu1 %v3136_v35  ;;  %3725 = vmatprep.subr.mxu0 %v3957_v40 }
 0x5bd   :  { %3714 = vmatprep.subr.mxu1 %v3957_v40 }
 0x5be   :  { %3715 = vmatpush3.msra.mxu1 %v3135_v37 }
 0x5bf   :  { %3716 = vmatprep.subr.mxu1 %v3957_v40 }
 0x5c0   :  { %3717 = vmatpush3.msra.mxu1 %v3134_v39  ;;  %v3182_v39 = vld [vmem:[%s5414_s11 + $0x160] sm:$0xff] }
 0x5c1   :  { %3718 = vmatprep.subr.mxu1 %v3957_v40 }
 0x5c2   :  { %3719 = vmatpush3.msra.mxu1 %v3133_v41  ;;  %v3181_v41 = vld [vmem:[%s5414_s11 + $0x158] sm:$0xff] }
 0x5c3   :  { %3720 = vmatprep.subr.mxu1 %v3957_v40 }
 0x5c4   :  { %3721 = vmatpush3.msra.mxu1 %v3132_v42  ;;  %v3186_v42 = vld [vmem:[%s5413_s10 + $0x6] sm:$0x3] }
 0x5c5   :  { %3735 = vmatprep.subr.mxu1 %v3957_v40 }
 0x659   :  { %v1866_v43 = vpop.f32.mrf.mxu0 }
 0x65b   :  { %v3644_v44 = vpop.f32.mrf.mxu0 }
 0x65c   :  { %v3180_v44 = vld [vmem:[%s5414_s11 + $0x150] sm:$0xff] }
 0x65d   :  { %v1796_v45 = vpop.f32.mrf.mxu1 }
 0x65e   :  { %v1867_v46 = vadd.f32 %v1866_v43, %v1796_v45  ;;  %v3203_v43 = vld [vmem:[%s5414_s11 + $0x1f8] sm:$0xff]  ;;  %v3202_v45 = vld [vmem:[%s5414_s11 + $0x1f0] sm:$0xff] }
 0x65f   :  { %v3609_v47 = vpop.f32.mrf.mxu1 }
 0x660   :  { %v3201_v47 = vld [vmem:[%s5414_s11 + $0x1e8] sm:$0xff] }
 0x661   :  { %v1941_v48 = vpop.f32.mrf.mxu1 }
 0x662   :  { %3683 = vmatmul.mubr.f32.vlgmr.msra.gmra.mxu0 %v1941_v48  ;;  %v3178_v48 = vld [vmem:[%s5414_s11 + $0x140] sm:$0xff] }
 0x663   :  { %v3649_v49 = vpop.f32.mrf.mxu1  ;;  %3727 = vmatprep.mubr.msk.f32.mxu0 %vm3958_vm3, %v3957_v40 }
 0x664   :  { %v3200_v49 = vld [vmem:[%s5414_s11 + $0x1e0] sm:$0xff] }
 0x665   :  { %v2104_v50 = vpop.f32.mrf.mxu1 }
 0x666   :  { %3723 = vmatmul.mubr.f32.vlgmr.msra.gmra.mxu1 %v2104_v50  ;;  %v3177_v50 = vld [vmem:[%s5414_s11 + $0x138] sm:$0xff] }
 0x667   :  { %v3689_v51 = vpop.f32.mrf.mxu1  ;;  %3767 = vmatprep.mubr.msk.f32.mxu1 %vm3958_vm3, %v3957_v40  ;;  %3736 = vmatpush3.msra.mxu1 %v3167_v52  ;;  %v3176_v52 = vld [vmem:[%s5414_s11 + $0x130] sm:$0xff] }
 0x668   :  { %3737 = vmatprep.subr.mxu1 %v3957_v40  ;;  %v3199_v51 = vld [vmem:[%s5414_s11 + $0x1d8] sm:$0xff] }
 0x669   :  { %3738 = vmatpush3.msra.mxu1 %v3166_v53  ;;  %v3198_v53 = vld [vmem:[%s5414_s11 + $0x1d0] sm:$0xff] }
 0x66a   :  { %3739 = vmatprep.subr.mxu1 %v3957_v40 }
 0x66b   :  { %3740 = vmatpush3.msra.mxu1 %v3165_v54  ;;  %v3175_v54 = vld [vmem:[%s5414_s11 + $0x128] sm:$0xff] }
 0x66c   :  { %3741 = vmatprep.subr.mxu1 %v3957_v40 }
 0x66d   :  { %3742 = vmatpush3.msra.mxu1 %v3164_v55  ;;  %v3197_v55 = vld [vmem:[%s5414_s11 + $0x1c8] sm:$0xff] }
 0x66e   :  { %3743 = vmatprep.subr.mxu1 %v3957_v40 }
 0x66f   :  { %3744 = vmatpush3.msra.mxu1 %v3163_v56  ;;  %v3174_v56 = vld [vmem:[%s5414_s11 + $0x120] sm:$0xff] }
 0x670   :  { %3745 = vmatprep.subr.mxu1 %v3957_v40 }
 0x671   :  { %3746 = vmatpush3.msra.mxu1 %v3162_v57  ;;  %v3196_v57 = vld [vmem:[%s5414_s11 + $0x1c0] sm:$0xff] }
 0x672   :  { %3747 = vmatprep.subr.mxu1 %v3957_v40 }
 0x673   :  { %3748 = vmatpush3.msra.mxu1 %v3161_v58  ;;  %v3173_v58 = vld [vmem:[%s5414_s11 + $0x118] sm:$0xff] }
 0x674   :  { %3749 = vmatprep.subr.mxu1 %v3957_v40 }
 0x675   :  { %3750 = vmatpush3.msra.mxu1 %v3160_v59  ;;  %v3195_v59 = vld [vmem:[%s5414_s11 + $0x1b8] sm:$0xff] }
 0x676   :  { %3751 = vmatprep.subr.mxu1 %v3957_v40 }
 0x677   :  { %3752 = vmatpush3.msra.mxu1 %v3159_v60  ;;  %v3194_v60 = vld [vmem:[%s5414_s11 + $0x1b0] sm:$0xff] }
 0x678   :  { %3753 = vmatprep.subr.mxu1 %v3957_v40 }
 0x679   :  { %3754 = vmatpush3.msra.mxu1 %v3158_v61  ;;  %v3193_v61 = vld [vmem:[%s5414_s11 + $0x1a8] sm:$0xff] }
 0x67a   :  { %3755 = vmatprep.subr.mxu1 %v3957_v40 }
 0x67b   :  { %3756 = vmatpush3.msra.mxu1 %v3157_v62  ;;  %v3172_v62 = vld [vmem:[%s5414_s11 + $0x110] sm:$0xff] }
 0x67c   :  { %3757 = vmatprep.subr.mxu1 %v3957_v40 }
 0x67d   :  { %3758 = vmatpush3.msra.mxu1 %v3156_v63  ;;  %v3192_v63 = vld [vmem:[%s5414_s11 + $0x1a0] sm:$0xff] }
 0x67e   :  { %3759 = vmatprep.subr.mxu1 %v3957_v40 }
 0x67f   :  { %3760 = vmatpush3.msra.mxu1 %v3155_v0  ;;  %v3171_v0 = vld [vmem:[%s5414_s11 + $0x108] sm:$0xff] }
 0x680   :  { %3761 = vmatprep.subr.mxu1 %v3957_v40 }
 0x681   :  { %3762 = vmatpush3.msra.mxu1 %v3154_v1  ;;  %v3191_v1 = vld [vmem:[%s5414_s11 + $0x198] sm:$0xff] }
 0x682   :  { %3763 = vmatprep.subr.mxu1 %v3957_v40 }
 0x683   :  { %3764 = vmatpush3.msra.mxu1 %v3153_v28 }
 0x684   :  { %3765 = vmatprep.subr.mxu1 %v3957_v40 }
 0x685   :  { %3766 = vmatpush3.msra.mxu1 %v3152_v30 }
 0x686   :  { %3805 = vmatprep.subr.mxu1 %v3957_v40 }
 0x722   :  { %v2028_v2 = vpop.f32.mrf.mxu0 }
 0x723   :  { %v2032_v4 = vadd.f32 %v2028_v2, %v1867_v46  ;;  %v3179_v46 = vld [vmem:[%s5414_s11 + $0x148] sm:$0xff]  ;;  %v3170_v2 = vld [vmem:[%s5414_s11 + $0x100] sm:$0xff] }
 0x724   :  { %v3684_v3 = vpop.f32.mrf.mxu0 }
 0x725   :  { %v3190_v3 = vld [vmem:[%s5414_s11 + $0x190] sm:$0xff] }
 0x726   :  { %v2191_v6 = vpop.f32.mrf.mxu1 }
 0x727   :  { %v2195_v7 = vadd.f32 %v2191_v6, %v2032_v4  ;;  %v3189_v4 = vld [vmem:[%s5414_s11 + $0x188] sm:$0xff] }
 0x728   :  { %v3724_v8 = vpop.f32.mrf.mxu1 }
 0x729   :  { %v2202_v9 = vadd.f32 %v3148_v5, %v2195_v7  ;;  %v3188_v5 = vld [vmem:[%s5414_s11 + $0x180] sm:$0xff]  ;;  %s3959_s11 = smov [#allocation4]  }
 0x72a   :  { %s2894_s10 = sshll.u32 %s3959_s11, 4  ;;  %s2895_s10 = int_to_ptr.vmem [resolvable:$true] %s2894_s10 }
 0x72b   :  { %v5149_v10 = vmax.f32 %v2202_v9, 0.0  ;;  %s3893_s19 = scalar_lea.vmem %s2895_s10, 32  ;;  %p3898_p1 = scmp.lt.s32.totalorder %s2895_s10, %s2895_s10 }
 0x72c   :  { %p3894_p0 = scmp.ne.s32.totalorder %s2895_s10, %s3893_s19  ;;  %p3899_p2 = scmp.lt.s32.totalorder %s3893_s19, %s3893_s19 }
 0x72d   :  { %3726 = vmatpush3.msra.mxu0 %v5149_v10 }
 0x72e   :  { %3728 = vmatmul.mubr.msk.f32.vlgmr.msra.gmra.mxu0 %vm1548_vm4, %v2205_v11  ;;  %3730 = vmatprep.subr.mxu0 %v3957_v40  ;;  %p3900_p3 = por %p3899_p2, %p3898_p1 }
 0x72f   :  { %3731 = vmatpush3.msra.mxu0 %v5149_v10  ;;  %3732 = vmatprep.mubr.msk.f32.mxu0 %vm3958_vm3, %v3957_v40 }
 0x730   :  { %3770 = vmatprep.subr.mxu0 %v3957_v40  ;;  %p3901_p4 = pnand %p3900_p3, %p3894_p0 }
 0x732   :  { %3733 = vmatmul.mubr.msk.f32.vlgmr.msra.gmra.mxu0 %vm1548_vm4, %v3150_v12 }
 0x733   :  { %3771 = vmatpush3.msra.mxu0 %v2294_v13  ;;  %3802 = vmatprep.mubr.msk.f32.mxu0 %vm3958_vm3, %v3957_v40 }
 0x734   :  { %3772 = vmatprep.subr.mxu0 %v3957_v40 }
 0x735   :  { %3773 = vmatpush3.msra.mxu0 %v2293_v14 }
 0x736   :  { %3774 = vmatprep.subr.mxu0 %v3957_v40 }
 0x737   :  { %3775 = vmatpush3.msra.mxu0 %v2292_v15 }
 0x738   :  { %3776 = vmatprep.subr.mxu0 %v3957_v40 }
 0x739   :  { %3777 = vmatpush3.msra.mxu0 %v2291_v16 }
 0x73a   :  { %3778 = vmatprep.subr.mxu0 %v3957_v40 }
 0x73b   :  { %3779 = vmatpush3.msra.mxu0 %v2290_v18 }
 0x73c   :  { %3780 = vmatprep.subr.mxu0 %v3957_v40 }
 0x73d   :  { %3781 = vmatpush3.msra.mxu0 %v2289_v19 }
 0x73e   :  { %3782 = vmatprep.subr.mxu0 %v3957_v40 }
 0x73f   :  { %3783 = vmatpush3.msra.mxu0 %v2288_v17 }
 0x740   :  { %3784 = vmatprep.subr.mxu0 %v3957_v40 }
 0x741   :  { %3785 = vmatpush3.msra.mxu0 %v2287_v21 }
 0x742   :  { %3786 = vmatprep.subr.mxu0 %v3957_v40 }
 0x743   :  { %3787 = vmatpush3.msra.mxu0 %v2286_v22 }
 0x744   :  { %3788 = vmatprep.subr.mxu0 %v3957_v40 }
 0x745   :  { %3789 = vmatpush3.msra.mxu0 %v2285_v23 }
 0x746   :  { %3790 = vmatprep.subr.mxu0 %v3957_v40 }
 0x747   :  { %3791 = vmatpush3.msra.mxu0 %v2284_v24 }
 0x748   :  { %3792 = vmatprep.subr.mxu0 %v3957_v40 }
 0x749   :  { %3793 = vmatpush3.msra.mxu0 %v2283_v20 }
 0x74a   :  { %3794 = vmatprep.subr.mxu0 %v3957_v40 }
 0x74b   :  { %3795 = vmatpush3.msra.mxu0 %v2282_v25 }
 0x74c   :  { %3796 = vmatprep.subr.mxu0 %v3957_v40 }
 0x74d   :  { %3797 = vmatpush3.msra.mxu0 %v2281_v26 }
 0x74e   :  { %3798 = vmatprep.subr.mxu0 %v3957_v40 }
 0x74f   :  { %3799 = vmatpush3.msra.mxu0 %v2280_v27 }
 0x750   :  { %3800 = vmatprep.subr.mxu0 %v3957_v40 }
 0x751   :  { %3801 = vmatpush3.msra.mxu0 %v2279_v29 }
 0x752   :  { %3810 = vmatprep.subr.mxu0 %v3957_v40 }
 0x7ee   :  { %v2275_v32 = vpop.f32.mrf.mxu0 }
 0x7ef   :  { %3803 = vmatmul.mubr.f32.vlgmr.msra.gmra.mxu0 %v2275_v32 }
 0x7f0   :  { %v3729_v34 = vpop.f32.mrf.mxu0  ;;  %3811 = vmatpush3.msra.mxu0 %v3185_v31  ;;  %3842 = vmatprep.mubr.msk.f32.mxu0 %vm3958_vm3, %v3957_v40 }
 0x7f1   :  { %3812 = vmatprep.subr.mxu0 %v3957_v40 }
 0x7f2   :  { %v2366_v35 = vpop.f32.mrf.mxu0  ;;  %3813 = vmatpush3.msra.mxu0 %v3184_v33 }
 0x7f3   :  { %3768 = vmatmul.mubr.f32.vlgmr.msra.gmra.mxu1 %v2366_v35  ;;  %3814 = vmatprep.subr.mxu0 %v3957_v40 }
 0x7f4   :  { %3806 = vmatpush3.msra.mxu1 %v5149_v10  ;;  %3807 = vmatprep.mubr.msk.f32.mxu1 %vm3958_vm3, %v3957_v40  ;;  %v3734_v37 = vpop.f32.mrf.mxu0 }
 0x7f5   :  { %3845 = vmatprep.subr.mxu1 %v3957_v40  ;;  %3815 = vmatpush3.msra.mxu0 %v3183_v36 }
 0x7f6   :  { %3816 = vmatprep.subr.mxu0 %v3957_v40 }
 0x7f7   :  { %3808 = vmatmul.mubr.msk.f32.vlgmr.msra.gmra.mxu1 %vm1548_vm4, %v3168_v38  ;;  %3817 = vmatpush3.msra.mxu0 %v3182_v39 }
 0x7f8   :  { %3846 = vmatpush3.msra.mxu1 %v5149_v10  ;;  %3847 = vmatprep.mubr.msk.f32.mxu1 %vm3958_vm3, %v3957_v40 }
 0x7f9   :  { %3850 = vmatprep.subr.mxu1 %v3957_v40  ;;  %3818 = vmatprep.subr.mxu0 %v3957_v40 }
 0x7fa   :  { %3819 = vmatpush3.msra.mxu0 %v3181_v41 }
 0x7fb   :  { %3848 = vmatmul.mubr.msk.f32.vlgmr.msra.gmra.mxu1 %vm1548_vm4, %v3186_v42  ;;  %3820 = vmatprep.subr.mxu0 %v3957_v40 }
 0x7fc   :  { %3851 = vmatpush3.msra.mxu1 %v3203_v43  ;;  %3821 = vmatpush3.msra.mxu0 %v3180_v44 }
 0x7fd   :  { %3852 = vmatprep.subr.mxu1 %v3957_v40  ;;  %3822 = vmatprep.subr.mxu0 %v3957_v40 }
 0x7fe   :  { %3853 = vmatpush3.msra.mxu1 %v3202_v45  ;;  %3823 = vmatpush3.msra.mxu0 %v3179_v46 }
 0x7ff   :  { %3854 = vmatprep.subr.mxu1 %v3957_v40  ;;  %3824 = vmatprep.subr.mxu0 %v3957_v40 }
 0x800   :  { %3855 = vmatpush3.msra.mxu1 %v3201_v47  ;;  %3825 = vmatpush3.msra.mxu0 %v3178_v48 }
 0x801   :  { %3856 = vmatprep.subr.mxu1 %v3957_v40  ;;  %3826 = vmatprep.subr.mxu0 %v3957_v40 }
 0x802   :  { %3857 = vmatpush3.msra.mxu1 %v3200_v49  ;;  %3827 = vmatpush3.msra.mxu0 %v3177_v50 }
 0x803   :  { %3858 = vmatprep.subr.mxu1 %v3957_v40  ;;  %3828 = vmatprep.subr.mxu0 %v3957_v40 }
 0x804   :  { %3859 = vmatpush3.msra.mxu1 %v3199_v51  ;;  %3829 = vmatpush3.msra.mxu0 %v3176_v52 }
 0x805   :  { %3860 = vmatprep.subr.mxu1 %v3957_v40  ;;  %3830 = vmatprep.subr.mxu0 %v3957_v40 }
 0x806   :  { %3861 = vmatpush3.msra.mxu1 %v3198_v53  ;;  %3831 = vmatpush3.msra.mxu0 %v3175_v54 }
 0x807   :  { %3862 = vmatprep.subr.mxu1 %v3957_v40  ;;  %3832 = vmatprep.subr.mxu0 %v3957_v40 }
 0x808   :  { %3863 = vmatpush3.msra.mxu1 %v3197_v55  ;;  %3833 = vmatpush3.msra.mxu0 %v3174_v56 }
 0x809   :  { %3864 = vmatprep.subr.mxu1 %v3957_v40  ;;  %3834 = vmatprep.subr.mxu0 %v3957_v40 }
 0x80a   :  { %3865 = vmatpush3.msra.mxu1 %v3196_v57  ;;  %3835 = vmatpush3.msra.mxu0 %v3173_v58 }
 0x80b   :  { %3866 = vmatprep.subr.mxu1 %v3957_v40  ;;  %3836 = vmatprep.subr.mxu0 %v3957_v40 }
 0x80c   :  { %3867 = vmatpush3.msra.mxu1 %v3195_v59  ;;  %3882 = vmatprep.mubr.msk.f32.mxu1 %vm3958_vm3, %v3957_v40 }
 0x80d   :  { %3868 = vmatprep.subr.mxu1 %v3957_v40  ;;  %3837 = vmatpush3.msra.mxu0 %v3172_v62 }
 0x80e   :  { %3869 = vmatpush3.msra.mxu1 %v3194_v60  ;;  %3838 = vmatprep.subr.mxu0 %v3957_v40 }
 0x80f   :  { %3870 = vmatprep.subr.mxu1 %v3957_v40  ;;  %3839 = vmatpush3.msra.mxu0 %v3171_v0 }
 0x810   :  { %3871 = vmatpush3.msra.mxu1 %v3193_v61  ;;  %3840 = vmatprep.subr.mxu0 %v3957_v40 }
 0x811   :  { %3872 = vmatprep.subr.mxu1 %v3957_v40  ;;  %3841 = vmatpush3.msra.mxu0 %v3170_v2 }
 0x812   :  { %3873 = vmatpush3.msra.mxu1 %v3192_v63 }
 0x813   :  { %3874 = vmatprep.subr.mxu1 %v3957_v40 }
 0x814   :  { %3875 = vmatpush3.msra.mxu1 %v3191_v1 }
 0x815   :  { %3876 = vmatprep.subr.mxu1 %v3957_v40 }
 0x816   :  { %3877 = vmatpush3.msra.mxu1 %v3190_v3 }
 0x817   :  { %3878 = vmatprep.subr.mxu1 %v3957_v40 }
 0x818   :  { %3879 = vmatpush3.msra.mxu1 %v3189_v4 }
 0x819   :  { %3880 = vmatprep.subr.mxu1 %v3957_v40  ;;  %v3204_v40 = vld [vmem:[%s5415_s12] ss:$0 sm:$0xff] }
 0x81a   :  { %3881 = vmatpush3.msra.mxu1 %v3188_v5 }
 0x8af   :  { %v2523_v6 = vpop.f32.mrf.mxu0 }
 0x8b1   :  { %v3804_v7 = vpop.f32.mrf.mxu0 }
 0x8b3   :  { %v2453_v8 = vpop.f32.mrf.mxu1 }
 0x8b4   :  { %v2524_v9 = vadd.f32 %v2523_v6, %v2453_v8 }
 0x8b5   :  { %v3769_v10 = vpop.f32.mrf.mxu1 }
 0x8b7   :  { %v2598_v11 = vpop.f32.mrf.mxu1 }
 0x8b8   :  { %3843 = vmatmul.mubr.f32.vlgmr.msra.gmra.mxu0 %v2598_v11 }
 0x8b9   :  { %v3809_v12 = vpop.f32.mrf.mxu1 }
 0x8bb   :  { %v2761_v13 = vpop.f32.mrf.mxu1 }
 0x8bc   :  { %3883 = vmatmul.mubr.f32.vlgmr.msra.gmra.mxu1 %v2761_v13 }
 0x8bd   :  { %v3849_v14 = vpop.f32.mrf.mxu1 }
 0x978   :  { %v2685_v15 = vpop.f32.mrf.mxu0 }
 0x979   :  { %v2689_v18 = vadd.f32 %v2685_v15, %v2524_v9 }
 0x97a   :  { %v3844_v16 = vpop.f32.mrf.mxu0 }
 0x97c   :  { %v2848_v19 = vpop.f32.mrf.mxu1 }
 0x97d   :  { %v2852_v17 = vadd.f32 %v2848_v19, %v2689_v18 }
 0x97e   :  { %v3884_v21 = vpop.f32.mrf.mxu1 }
 0x97f   :  { %v2859_v22 = vadd.f32 %v3204_v40, %v2852_v17 }
 0x981   :  { %v2860_v23 = vmul.f32 0.5, %v2859_v22  ;;  %2872 = vst.msk [vmem:[#allocation4] sm:$0x3] %vm2870_vm5, %v2859_v22 }
 0x983   :  { %v2861_v24 = vmul.f32 1.442695, %v2860_v23 }
 0x985   :  { %3891 = vpow2.f32 %v2861_v24 }
 0x986   :  { %3904 = shalt.err (!%p3901_p4)
}
 0x987   :  { %2897 = dma.vmem_to_hbm [thread:$0]  %s2895_s10, 32, %s5418_s15, [#allocation5]   ;;  %v2863_v25 = vld [vmem:[%s5416_s13] sm:$0x3] }
 0x988   :  { %s3960_s1 = smov 120   ;;  %s3961_s8 = smov [#allocation2]  }
 0x989   :  { %s2884_s21 = sshll.u32 %s3961_s8, 4  ;;  %s3962_s22 = smov [#allocation6]   ;;  %s2885_s21 = int_to_ptr.vmem [resolvable:$true] %s2884_s21 }
 0x98a   :  { %s2904_s6 = sshll.u32 %s3962_s22, 4  ;;  %s3913_s15 = scalar_lea.vmem %s2885_s21, 32  ;;  %s2905_s6 = int_to_ptr.vmem [resolvable:$true] %s2904_s6 }
 0x98b   :  { %p3914_p5 = scmp.ne.s32.totalorder %s2885_s21, %s3913_s15  ;;  %p3918_p6 = scmp.lt.s32.totalorder %s2885_s21, %s2885_s21 }
 0x98c   :  { %p3919_p7 = scmp.lt.s32.totalorder %s3913_s15, %s3913_s15 }
 0x98e   :  { %p3920_p8 = por %p3919_p7, %p3918_p6 }
 0x990   :  { %p3921_p9 = pnand %p3920_p8, %p3914_p5 }
 0x992   :  { %v3892_v20 = vpop.eup %3891 }
 0x993   :  { %2865 = vrot.lane.b32.xlu0 %v3892_v20, %s3960_s1 }
 0x997   :  { %2874 = vrot.lane.b32.xlu0 %v2859_v22, %s3960_s1 }
 0xa05   :  { %v2866_v26 = vpop.permute.xlu0 %2865 }
 0xa06   :  { %v2868_v27 = vmul.f32 %v2866_v26, %v2863_v25 }
 0xa08   :  { %v2869_v28 = vadd.f32 %v2868_v27, %v2859_v22 }
 0xa09   :  { %v2875_v29 = vpop.permute.xlu0 %2874 }
 0xa0a   :  { %2877 = vst.msk [vmem:[#allocation6] sm:$0x3] %vm2870_vm5, %v2875_v29  ;;  %2871 = vst.msk [vmem:[#allocation2] sm:$0x3] %vm2870_vm5, %v2869_v28 }
 0xa0b   :  { %3924 = shalt.err (!%p3921_p9)
}
 0xa0c   :  { %2887 = dma.vmem_to_hbm [thread:$0]  %s2885_s21, 32, %s5417_s14, [#allocation3]  }
 0xa0d   :  { %s3933_s4 = scalar_lea.vmem %s2905_s6, 32  ;;  %p3938_p11 = scmp.lt.s32.totalorder %s2905_s6, %s2905_s6 }
 0xa0e   :  { %p3934_p10 = scmp.ne.s32.totalorder %s2905_s6, %s3933_s4  ;;  %p3939_p12 = scmp.lt.s32.totalorder %s3933_s4, %s3933_s4 }
 0xa10   :  { %p3940_p13 = por %p3939_p12, %p3938_p11 }
 0xa12   :  { %p3941_p0 = pnand %p3940_p13, %p3934_p10 }
 0xa14   :  { %3944 = shalt.err (!%p3941_p0)
}
 0xa15   :  { %2907 = dma.vmem_to_hbm [thread:$0]  %s2905_s6, 32, %s5419_s16, [#allocation5]  }
 0xa16   :  { %3953 = dma.done.wait [#allocation3], 32  }
 0xa17   :  { %3954 = vsyncadd [#allocation3], 4294967264 }
 0xa18   :  { %3955 = dma.done.wait [#allocation5], 64  }
 0xa19   :  { %3956 = vsyncadd [#allocation5], 4294967232 }
 0xa1a   :  { %2917 = vsyncpa [#allocation3], 1 }
 0xa1b   :  { %2918 = vsyncpa [#allocation5], 1 }

</bundles_post_ra>
